<compile_context>
chip_gen: v6e
topology: v6e:2x2x1
jax: 0.10.0
libtpu: 0.0.40
codegen_flags: <defaults>
</compile_context>

<pallas_src>
import jax
import jax.numpy as jnp
from jax.experimental import pallas as pl
from jax.experimental.pallas import tpu as pltpu

GN_GROUPS = 4
GN_EPS = 1e-5


# ----------------------------------------------------------------------------
# Fused Pallas kernel.  Layout: channel-major, padded-flat spatial axis
# ((H+2)*(W+2) flattened on lanes, zero ring) for the conv stages; lane-dense
# (c_out, H*W) for the output.
# ----------------------------------------------------------------------------
def _make_up_kernel(H, W, c_skip, c_x, c_out, groups):
    Hp, Wp = H + 2, W + 2
    PHW = Hp * Wp
    HW = H * W
    K = Wp + 1                       # max |window shift|: zero-extend K lanes
    gsz = c_out // groups
    inv_n = 1.0 / float(gsz * HW)    # 1 / elements per GN group

    def kernel(x_ref, skip_ref, t_ref, um_ref, sc_ref, gm_ref, valid_ref,
               w1_ref, b1_ref, g1_ref, bt1_ref,
               w2_ref, b2_ref, g2_ref, bt2_ref,
               wet_ref, bel_ref, o_ref):
        valid = valid_ref[...]                                  # (1, PHW) f32

        # (c_out, groups) group-membership matrix (no (C,C) mask, no int div).
        ci = jax.lax.broadcasted_iota(jnp.int32, (c_out, groups), 0)
        gi = jax.lax.broadcasted_iota(jnp.int32, (c_out, groups), 1)
        gmask = ((ci >= gi * gsz) & (ci < (gi + 1) * gsz)).astype(jnp.float32)

        def conv_gn_silu(v, wm, bias, gamma, beta, zero_ring):
            # v: (C, PHW) padded-flat activation with a zero ring.
            # 3x3 conv = 9 statically shifted lane windows of ONE zero-extended
            # bf16 copy (shared loads), stacked on sublanes -> one MXU matmul.
            C = v.shape[0]
            vb = v.astype(jnp.bfloat16)
            z = jnp.zeros((C, K), jnp.bfloat16)
            vp = jnp.concatenate([z, vb, z], axis=1)            # (C, PHW+2K)
            parts = []
            for kh in range(3):
                for kw in range(3):
                    s = K + (kh - 1) * Wp + (kw - 1)
                    parts.append(vp[:, s:s + PHW])              # (C, PHW) bf16
            patches = jnp.concatenate(parts, axis=0)            # (9C, PHW)
            acc = jnp.dot(wm, patches, preferred_element_type=jnp.float32)
            acc = (acc + bias) * valid                          # zero the ring

            # GroupNorm stats over (group channels x H x W), all in f32.
            # TODO(synk): single-pass E[x^2]-E[x]^2; center first if accuracy
            # vs. the PyTorch reference gets tight.
            ch_s = jnp.sum(acc, axis=1, keepdims=True)          # (c_out, 1)
            ch_q = jnp.sum(acc * acc, axis=1, keepdims=True)
            g_s = jnp.sum(gmask * ch_s, axis=0, keepdims=True)  # (1, G)
            g_q = jnp.sum(gmask * ch_q, axis=0, keepdims=True)
            mean_g = g_s * inv_n
            var_g = g_q * inv_n - mean_g * mean_g
            inv_g = jax.lax.rsqrt(var_g + GN_EPS)
            mean_c = jnp.sum(gmask * mean_g, axis=1, keepdims=True)  # (c_out,1)
            inv_c = jnp.sum(gmask * inv_g, axis=1, keepdims=True)

            # Folded GN affine: y = acc*scale + shift (one fewer full mul).
            scale_c = inv_c * gamma
            shift_c = beta - mean_c * scale_c
            y = acc * scale_c + shift_c
            y = y * jax.nn.sigmoid(y)                           # SiLU (EUP)
            if zero_ring:
                y = y * valid                # keep ring 0 for the next conv
            return y

        # ---- in-kernel glue: upsample + channel concat + padded layout ----
        # bilinear x2 (align_corners=True) as one matmul, f32 for precision.
        xup = jnp.dot(x_ref[0], um_ref[...],
                      preferred_element_type=jnp.float32)       # (c_x, HW)
        xcat = jnp.concatenate([skip_ref[0], xup.astype(jnp.bfloat16)],
                               axis=0)                          # (c_in, HW)
        # scatter the flat HxW grid into the zero-ringed padded-flat layout
        # (0/1 matrix, exact in bf16).
        xpad = jnp.dot(xcat, sc_ref[...],
                       preferred_element_type=jnp.float32)      # (c_in, PHW)

        # DoubleConv: conv1 then conv2 applied TWICE (exactly as the reference
        # model_1.py forward does).
        h = conv_gn_silu(xpad, w1_ref[...], b1_ref[...], g1_ref[...],
                         bt1_ref[...], True)
        h = conv_gn_silu(h, w2_ref[...], b2_ref[...], g2_ref[...],
                         bt2_ref[...], True)
        h = conv_gn_silu(h, w2_ref[...], b2_ref[...], g2_ref[...],
                         bt2_ref[...], False)   # last: ring handled by gather

        # emb_layer: Linear(SiLU(t)); wet is (c_out, emb_dim) (torch layout).
        t = t_ref[0]                                            # (1, E)
        st = t * jax.nn.sigmoid(t)
        emb = jnp.sum(wet_ref[...] * st, axis=1, keepdims=True) + bel_ref[...]

        # Gather interior pixels back to a lane-dense (c_out, H*W) output and
        # add the broadcast embedding.  Ring rows of gm are all-zero, so the
        # un-masked ring of the last stage never leaks.
        out = jnp.dot(h, gm_ref[...], preferred_element_type=jnp.float32) + emb
        o_ref[0] = out.astype(o_ref.dtype)

    return kernel, PHW, HW


# ----------------------------------------------------------------------------
# XLA-side glue: only metadata reshapes + shape-only constants (folded by XLA).
# ----------------------------------------------------------------------------
def _interp_matrix(n_in, n_out):
    """(n_out, n_in) bilinear align_corners=True interpolation matrix."""
    pos = jnp.linspace(0.0, n_in - 1.0, n_out)
    lo = jnp.clip(jnp.floor(pos).astype(jnp.int32), 0, n_in - 1)
    hi = jnp.minimum(lo + 1, n_in - 1)
    w = (pos - lo.astype(jnp.float32))[:, None]
    return (jax.nn.one_hot(lo, n_in, dtype=jnp.float32) * (1.0 - w)
            + jax.nn.one_hot(hi, n_in, dtype=jnp.float32) * w)


def up_forward_fn(params, x, skip_x, t):
    x = x.astype(jnp.float32)
    skip = skip_x.astype(jnp.float32)
    B, c_x, Hlo, Wlo = x.shape
    _, c_skip, H, W = skip.shape
    assert (H, W) == (2 * Hlo, 2 * Wlo)
    c_in = c_skip + c_x
    c_out, emb_dim = params["wet"].shape
    assert c_out % GN_GROUPS == 0
    assert params["w1m"].shape == (c_out, 9 * c_in)

    Hp, Wp = H + 2, W + 2
    HWlo = Hlo * Wlo
    kernel, PHW, HW = _make_up_kernel(H, W, c_skip, c_x, c_out, GN_GROUPS)

    # Shape-only constants (constant-folded; DMA'd into VMEM once).
    Ly = _interp_matrix(Hlo, H)                                  # (H, Hlo)
    Lx = _interp_matrix(Wlo, W)                                  # (W, Wlo)
    um = jnp.einsum("oh,pw->hwop", Ly, Lx).reshape(HWlo, HW)     # upsample
    q = jnp.arange(HW)
    tgt = (q // W + 1) * Wp + (q % W + 1)
    sc_f32 = jax.nn.one_hot(tgt, PHW, dtype=jnp.float32)         # (HW, PHW)
    gm = sc_f32.T                                                # (PHW, HW)
    valid = jnp.sum(sc_f32, axis=0, keepdims=True)               # (1, PHW)
    sc = sc_f32.astype(jnp.bfloat16)                             # 0/1: exact

    # Metadata-only reshapes of the kernel inputs; skip fed as bf16.
    x2d = x.reshape(B, c_x, HWlo)
    skip2d = skip.reshape(B, c_skip, HW).astype(jnp.bfloat16)
    t3 = t.astype(jnp.float32).reshape(B, 1, emb_dim)

    const2d = lambda b: (0, 0)
    grid_spec = pltpu.PrefetchScalarGridSpec(
        num_scalar_prefetch=0,
        grid=(B,),
        in_specs=[
            pl.BlockSpec((1, c_x, HWlo), lambda b: (b, 0, 0)),    # x (f32)
            pl.BlockSpec((1, c_skip, HW), lambda b: (b, 0, 0)),   # skip (bf16)
            pl.BlockSpec((1, 1, emb_dim), lambda b: (b, 0, 0)),   # t
            pl.BlockSpec((HWlo, HW), const2d),                    # um  (f32)
            pl.BlockSpec((HW, PHW), const2d),                     # sc  (bf16)
            pl.BlockSpec((PHW, HW), const2d),                     # gm  (f32)
            pl.BlockSpec((1, PHW), const2d),                      # valid
            pl.BlockSpec((c_out, 9 * c_in), const2d),             # w1m (bf16)
            pl.BlockSpec((c_out, 1), const2d),                    # b1
            pl.BlockSpec((c_out, 1), const2d),                    # g1
            pl.BlockSpec((c_out, 1), const2d),                    # bt1
            pl.BlockSpec((c_out, 9 * c_out), const2d),            # w2m (bf16)
            pl.BlockSpec((c_out, 1), const2d),                    # b2
            pl.BlockSpec((c_out, 1), const2d),                    # g2
            pl.BlockSpec((c_out, 1), const2d),                    # bt2
            pl.BlockSpec((c_out, emb_dim), const2d),              # wet
            pl.BlockSpec((c_out, 1), const2d),                    # bel
        ],
        out_specs=pl.BlockSpec((1, c_out, HW), lambda b: (b, 0, 0)),
    )

    out = pl.pallas_call(
        kernel,
        out_shape=jax.ShapeDtypeStruct((B, c_out, HW), jnp.float32),
        grid_spec=grid_spec,
        compiler_params=pltpu.CompilerParams(
            dimension_semantics=("parallel",)),
    )(x2d, skip2d, t3, um, sc, gm, valid,
      params["w1m"], params["b1"], params["g1"], params["bt1"],
      params["w2m"], params["b2"], params["g2"], params["bt2"],
      params["wet"], params["bel"])

    # Lane-dense (B, c_out, H*W) -> NCHW: metadata-only reshape.
    return out.reshape(B, c_out, H, W)


up_forward = jax.jit(up_forward_fn)


# ----------------------------------------------------------------------------
# Parameter construction (random init; conv weights pre-laid-out for the
# kernel: (c_out, 9*c_in) with columns ordered (kh, kw, c_in), bf16).
# ----------------------------------------------------------------------------
def init_up_params(key, in_c, out_c, emb_dim=64):
    ks = jax.random.split(key, 6)
    w1 = 0.1 * jax.random.normal(ks[0], (3, 3, in_c, out_c), jnp.float32)
    w2 = 0.1 * jax.random.normal(ks[1], (3, 3, out_c, out_c), jnp.float32)
    we = 0.1 * jax.random.normal(ks[2], (out_c, emb_dim), jnp.float32)
    return {
        "w1m": w1.reshape(9 * in_c, out_c).T.astype(jnp.bfloat16),
        "b1": 0.05 * jax.random.normal(ks[3], (out_c, 1), jnp.float32),
        "g1": jnp.ones((out_c, 1), jnp.float32),
        "bt1": jnp.zeros((out_c, 1), jnp.float32),
        "w2m": w2.reshape(9 * out_c, out_c).T.astype(jnp.bfloat16),
        "b2": 0.05 * jax.random.normal(ks[4], (out_c, 1), jnp.float32),
        "g2": jnp.ones((out_c, 1), jnp.float32),
        "bt2": jnp.zeros((out_c, 1), jnp.float32),
        "wet": we,                     # torch Linear layout: (out, in)
        "bel": 0.05 * jax.random.normal(ks[5], (out_c, 1), jnp.float32),
    }


# ----------------------------------------------------------------------------
if __name__ == "__main__":
    in_c, out_c, emb_dim = 8, 8, 64
    B, Hs, Ws = 2, 8, 8                  # x is the low-res feature map
    key = jax.random.PRNGKey(0)
    kp, kx, ksk, kt = jax.random.split(key, 4)

    params = init_up_params(kp, in_c, out_c, emb_dim)

    # NCHW inputs, matching PyTorch conventions:
    #   x:      (B, in_c//2, H,  W)
    #   skip_x: (B, in_c//2, 2H, 2W)   (so the concat gives in_c channels)
    x = jax.random.normal(kx, (B, in_c // 2, Hs, Ws), jnp.float32)
    skip_x = jax.random.normal(ksk, (B, in_c // 2, 2 * Hs, 2 * Ws), jnp.float32)
    t = jax.random.normal(kt, (B, emb_dim), jnp.float32)

    out = up_forward(params, x, skip_x, t)
    out = jax.block_until_ready(out)
    assert out.shape == (B, out_c, 2 * Hs, 2 * Ws), out.shape
    assert bool(jnp.all(jnp.isfinite(out)))
    print("KERNEL_OK")
</pallas_src>

<mosaic_0001>
module attributes {stable_mosaic.version = 11 : i64} {
  func.func @kernel(%arg0: i32, %arg1: memref<1x4x64xf32, #tpu.memory_space<vmem>>, %arg2: memref<1x4x256xbf16, #tpu.memory_space<vmem>>, %arg3: memref<1x1x64xf32, #tpu.memory_space<vmem>>, %arg4: memref<64x256xf32, #tpu.memory_space<vmem>>, %arg5: memref<256x324xbf16, #tpu.memory_space<vmem>>, %arg6: memref<324x256xf32, #tpu.memory_space<vmem>>, %arg7: memref<1x324xf32, #tpu.memory_space<vmem>>, %arg8: memref<8x72xbf16, #tpu.memory_space<vmem>>, %arg9: memref<8x1xf32, #tpu.memory_space<vmem>>, %arg10: memref<8x1xf32, #tpu.memory_space<vmem>>, %arg11: memref<8x1xf32, #tpu.memory_space<vmem>>, %arg12: memref<8x72xbf16, #tpu.memory_space<vmem>>, %arg13: memref<8x1xf32, #tpu.memory_space<vmem>>, %arg14: memref<8x1xf32, #tpu.memory_space<vmem>>, %arg15: memref<8x1xf32, #tpu.memory_space<vmem>>, %arg16: memref<8x64xf32, #tpu.memory_space<vmem>>, %arg17: memref<8x1xf32, #tpu.memory_space<vmem>>, %arg18: memref<1x8x256xf32, #tpu.memory_space<vmem>>) attributes {dimension_semantics = [#tpu.dimension_semantics<parallel>], iteration_bounds = array<i64: 2>, scalar_prefetch = 0 : i64, scratch_operands = 0 : i64, tpu.core_type = #tpu.core_type<tc>, window_params = [{transform_indices = @transform_0, window_bounds = array<i64: 1, 4, 64>}, {transform_indices = @transform_1, window_bounds = array<i64: 1, 4, 256>}, {transform_indices = @transform_2, window_bounds = array<i64: 1, 1, 64>}, {pipeline_mode = #tpu.pipeline_mode<synchronous>, transform_indices = @transform_3, window_bounds = array<i64: 64, 256>}, {pipeline_mode = #tpu.pipeline_mode<synchronous>, transform_indices = @transform_4, window_bounds = array<i64: 256, 324>}, {pipeline_mode = #tpu.pipeline_mode<synchronous>, transform_indices = @transform_5, window_bounds = array<i64: 324, 256>}, {pipeline_mode = #tpu.pipeline_mode<synchronous>, transform_indices = @transform_6, window_bounds = array<i64: 1, 324>}, {pipeline_mode = #tpu.pipeline_mode<synchronous>, transform_indices = @transform_7, window_bounds = array<i64: 8, 72>}, {pipeline_mode = #tpu.pipeline_mode<synchronous>, transform_indices = @transform_8, window_bounds = array<i64: 8, 1>}, {pipeline_mode = #tpu.pipeline_mode<synchronous>, transform_indices = @transform_9, window_bounds = array<i64: 8, 1>}, {pipeline_mode = #tpu.pipeline_mode<synchronous>, transform_indices = @transform_10, window_bounds = array<i64: 8, 1>}, {pipeline_mode = #tpu.pipeline_mode<synchronous>, transform_indices = @transform_11, window_bounds = array<i64: 8, 72>}, {pipeline_mode = #tpu.pipeline_mode<synchronous>, transform_indices = @transform_12, window_bounds = array<i64: 8, 1>}, {pipeline_mode = #tpu.pipeline_mode<synchronous>, transform_indices = @transform_13, window_bounds = array<i64: 8, 1>}, {pipeline_mode = #tpu.pipeline_mode<synchronous>, transform_indices = @transform_14, window_bounds = array<i64: 8, 1>}, {pipeline_mode = #tpu.pipeline_mode<synchronous>, transform_indices = @transform_15, window_bounds = array<i64: 8, 64>}, {pipeline_mode = #tpu.pipeline_mode<synchronous>, transform_indices = @transform_16, window_bounds = array<i64: 8, 1>}, {transform_indices = @transform_17, window_bounds = array<i64: 1, 8, 256>}]} {
    %c0 = arith.constant 0 : index
    %c0_0 = arith.constant 0 : index
    %0 = vector.load %arg7[%c0, %c0_0] : memref<1x324xf32, #tpu.memory_space<vmem>>, vector<1x324xf32>
    %1 = tpu.iota {dimensions = array<i32: 0>} : vector<8x4xi32>
    %2 = tpu.iota {dimensions = array<i32: 1>} : vector<8x4xi32>
    %c2_i32 = arith.constant 2 : i32
    %3 = vector.broadcast %c2_i32 : i32 to vector<8x4xi32>
    %4 = arith.muli %2, %3 : vector<8x4xi32>
    %5 = arith.cmpi sge, %1, %4 : vector<8x4xi32>
    %c1_i32 = arith.constant 1 : i32
    %6 = vector.broadcast %c1_i32 : i32 to vector<8x4xi32>
    %7 = arith.addi %2, %6 : vector<8x4xi32>
    %c2_i32_1 = arith.constant 2 : i32
    %8 = vector.broadcast %c2_i32_1 : i32 to vector<8x4xi32>
    %9 = arith.muli %7, %8 : vector<8x4xi32>
    %10 = arith.cmpi slt, %1, %9 : vector<8x4xi32>
    %11 = arith.andi %5, %10 : vector<8x4xi1>
    %12 = arith.extui %11 : vector<8x4xi1> to vector<8x4xi32>
    %13 = arith.sitofp %12 : vector<8x4xi32> to vector<8x4xf32>
    %c0_2 = arith.constant 0 : index
    %c0_3 = arith.constant 0 : index
    %c0_4 = arith.constant 0 : index
    %14 = vector.load %arg1[%c0_2, %c0_3, %c0_4] : memref<1x4x64xf32, #tpu.memory_space<vmem>>, vector<1x4x64xf32>
    %15 = vector.shape_cast %14 : vector<1x4x64xf32> to vector<4x64xf32>
    %c0_5 = arith.constant 0 : index
    %c0_6 = arith.constant 0 : index
    %16 = vector.load %arg4[%c0_5, %c0_6] : memref<64x256xf32, #tpu.memory_space<vmem>>, vector<64x256xf32>
    %cst = arith.constant dense<0.000000e+00> : vector<4x256xf32>
    %17 = tpu.matmul %15, %16, %cst {dimension_numbers = #tpu.dot_dimension_numbers<[1], [0], [0], [1], [0, 0, 1, 1], [], []>} : vector<4x64xf32>, vector<64x256xf32>, vector<4x256xf32> -> vector<4x256xf32>
    %c0_7 = arith.constant 0 : index
    %c0_8 = arith.constant 0 : index
    %c0_9 = arith.constant 0 : index
    %18 = vector.load %arg2[%c0_7, %c0_8, %c0_9] : memref<1x4x256xbf16, #tpu.memory_space<vmem>>, vector<1x4x256xbf16>
    %19 = vector.shape_cast %18 : vector<1x4x256xbf16> to vector<4x256xbf16>
    %20 = arith.truncf %17 : vector<4x256xf32> to vector<4x256xbf16>
    %21 = tpu.concatenate %19, %20 in 0 : vector<4x256xbf16>, vector<4x256xbf16> -> vector<8x256xbf16>
    %c0_10 = arith.constant 0 : index
    %c0_11 = arith.constant 0 : index
    %22 = vector.load %arg5[%c0_10, %c0_11] : memref<256x324xbf16, #tpu.memory_space<vmem>>, vector<256x324xbf16>
    %cst_12 = arith.constant dense<0.000000e+00> : vector<8x324xf32>
    %23 = tpu.matmul %21, %22, %cst_12 {dimension_numbers = #tpu.dot_dimension_numbers<[1], [0], [0], [1], [0, 0, 1, 1], [], []>} : vector<8x256xbf16>, vector<256x324xbf16>, vector<8x324xf32> -> vector<8x324xf32>
    %c0_13 = arith.constant 0 : index
    %c0_14 = arith.constant 0 : index
    %24 = vector.load %arg8[%c0_13, %c0_14] : memref<8x72xbf16, #tpu.memory_space<vmem>>, vector<8x72xbf16>
    %c0_15 = arith.constant 0 : index
    %c0_16 = arith.constant 0 : index
    %25 = vector.load %arg9[%c0_15, %c0_16] : memref<8x1xf32, #tpu.memory_space<vmem>>, vector<8x1xf32>
    %c0_17 = arith.constant 0 : index
    %c0_18 = arith.constant 0 : index
    %26 = vector.load %arg10[%c0_17, %c0_18] : memref<8x1xf32, #tpu.memory_space<vmem>>, vector<8x1xf32>
    %c0_19 = arith.constant 0 : index
    %c0_20 = arith.constant 0 : index
    %27 = vector.load %arg11[%c0_19, %c0_20] : memref<8x1xf32, #tpu.memory_space<vmem>>, vector<8x1xf32>
    %28 = arith.truncf %23 : vector<8x324xf32> to vector<8x324xbf16>
    %cst_21 = arith.constant 0.000000e+00 : bf16
    %29 = vector.broadcast %cst_21 : bf16 to vector<8x19xbf16>
    %30 = tpu.concatenate %29, %28, %29 in 1 : vector<8x19xbf16>, vector<8x324xbf16>, vector<8x19xbf16> -> vector<8x362xbf16>
    %31 = vector.extract_strided_slice %30 {offsets = [0, 0], sizes = [8, 324], strides = [1, 1]} : vector<8x362xbf16> to vector<8x324xbf16>
    %32 = vector.extract_strided_slice %30 {offsets = [0, 1], sizes = [8, 324], strides = [1, 1]} : vector<8x362xbf16> to vector<8x324xbf16>
    %33 = vector.extract_strided_slice %30 {offsets = [0, 2], sizes = [8, 324], strides = [1, 1]} : vector<8x362xbf16> to vector<8x324xbf16>
    %34 = vector.extract_strided_slice %30 {offsets = [0, 18], sizes = [8, 324], strides = [1, 1]} : vector<8x362xbf16> to vector<8x324xbf16>
    %35 = vector.extract_strided_slice %30 {offsets = [0, 19], sizes = [8, 324], strides = [1, 1]} : vector<8x362xbf16> to vector<8x324xbf16>
    %36 = vector.extract_strided_slice %30 {offsets = [0, 20], sizes = [8, 324], strides = [1, 1]} : vector<8x362xbf16> to vector<8x324xbf16>
    %37 = vector.extract_strided_slice %30 {offsets = [0, 36], sizes = [8, 324], strides = [1, 1]} : vector<8x362xbf16> to vector<8x324xbf16>
    %38 = vector.extract_strided_slice %30 {offsets = [0, 37], sizes = [8, 324], strides = [1, 1]} : vector<8x362xbf16> to vector<8x324xbf16>
    %39 = vector.extract_strided_slice %30 {offsets = [0, 38], sizes = [8, 324], strides = [1, 1]} : vector<8x362xbf16> to vector<8x324xbf16>
    %40 = tpu.concatenate %31, %32, %33, %34, %35, %36, %37, %38, %39 in 0 : vector<8x324xbf16>, vector<8x324xbf16>, vector<8x324xbf16>, vector<8x324xbf16>, vector<8x324xbf16>, vector<8x324xbf16>, vector<8x324xbf16>, vector<8x324xbf16>, vector<8x324xbf16> -> vector<72x324xbf16>
    %cst_22 = arith.constant dense<0.000000e+00> : vector<8x324xf32>
    %41 = tpu.matmul %24, %40, %cst_22 {dimension_numbers = #tpu.dot_dimension_numbers<[1], [0], [0], [1], [0, 0, 1, 1], [], []>} : vector<8x72xbf16>, vector<72x324xbf16>, vector<8x324xf32> -> vector<8x324xf32>
    %42 = vector.broadcast %25 : vector<8x1xf32> to vector<8x324xf32>
    %43 = arith.addf %41, %42 : vector<8x324xf32>
    %44 = vector.broadcast %0 : vector<1x324xf32> to vector<8x324xf32>
    %45 = arith.mulf %43, %44 : vector<8x324xf32>
    %cst_23 = arith.constant dense<0.000000e+00> : vector<8xf32>
    %46 = vector.multi_reduction <add>, %45, %cst_23 [1] : vector<8x324xf32> to vector<8xf32>
    %47 = vector.shape_cast %46 : vector<8xf32> to vector<8x1xf32>
    %48 = arith.mulf %45, %45 : vector<8x324xf32>
    %cst_24 = arith.constant dense<0.000000e+00> : vector<8xf32>
    %49 = vector.multi_reduction <add>, %48, %cst_24 [1] : vector<8x324xf32> to vector<8xf32>
    %50 = vector.shape_cast %49 : vector<8xf32> to vector<8x1xf32>
    %51 = vector.broadcast %47 : vector<8x1xf32> to vector<8x4xf32>
    %52 = arith.mulf %13, %51 : vector<8x4xf32>
    %cst_25 = arith.constant dense<0.000000e+00> : vector<4xf32>
    %53 = vector.multi_reduction <add>, %52, %cst_25 [0] : vector<8x4xf32> to vector<4xf32>
    %54 = vector.shape_cast %53 : vector<4xf32> to vector<1x4xf32>
    %55 = vector.broadcast %50 : vector<8x1xf32> to vector<8x4xf32>
    %56 = arith.mulf %13, %55 : vector<8x4xf32>
    %cst_26 = arith.constant dense<0.000000e+00> : vector<4xf32>
    %57 = vector.multi_reduction <add>, %56, %cst_26 [0] : vector<8x4xf32> to vector<4xf32>
    %58 = vector.shape_cast %57 : vector<4xf32> to vector<1x4xf32>
    %cst_27 = arith.constant 0.001953125 : f32
    %59 = vector.broadcast %cst_27 : f32 to vector<1x4xf32>
    %60 = arith.mulf %54, %59 : vector<1x4xf32>
    %cst_28 = arith.constant 0.001953125 : f32
    %61 = vector.broadcast %cst_28 : f32 to vector<1x4xf32>
    %62 = arith.mulf %58, %61 : vector<1x4xf32>
    %63 = arith.mulf %60, %60 : vector<1x4xf32>
    %64 = arith.subf %62, %63 : vector<1x4xf32>
    %cst_29 = arith.constant 9.99999974E-6 : f32
    %65 = vector.broadcast %cst_29 : f32 to vector<1x4xf32>
    %66 = arith.addf %64, %65 : vector<1x4xf32>
    %67 = math.rsqrt %66 : vector<1x4xf32>
    %68 = vector.broadcast %60 : vector<1x4xf32> to vector<8x4xf32>
    %69 = arith.mulf %13, %68 : vector<8x4xf32>
    %cst_30 = arith.constant dense<0.000000e+00> : vector<8xf32>
    %70 = vector.multi_reduction <add>, %69, %cst_30 [1] : vector<8x4xf32> to vector<8xf32>
    %71 = vector.shape_cast %70 : vector<8xf32> to vector<8x1xf32>
    %72 = vector.broadcast %67 : vector<1x4xf32> to vector<8x4xf32>
    %73 = arith.mulf %13, %72 : vector<8x4xf32>
    %cst_31 = arith.constant dense<0.000000e+00> : vector<8xf32>
    %74 = vector.multi_reduction <add>, %73, %cst_31 [1] : vector<8x4xf32> to vector<8xf32>
    %75 = vector.shape_cast %74 : vector<8xf32> to vector<8x1xf32>
    %76 = arith.mulf %75, %26 : vector<8x1xf32>
    %77 = arith.mulf %71, %76 : vector<8x1xf32>
    %78 = arith.subf %27, %77 : vector<8x1xf32>
    %79 = vector.broadcast %76 : vector<8x1xf32> to vector<8x324xf32>
    %80 = arith.mulf %45, %79 : vector<8x324xf32>
    %81 = vector.broadcast %78 : vector<8x1xf32> to vector<8x324xf32>
    %82 = arith.addf %80, %81 : vector<8x324xf32>
    %83 = arith.negf %82 : vector<8x324xf32>
    %84 = math.exp %83 : vector<8x324xf32>
    %cst_32 = arith.constant 1.000000e+00 : f32
    %85 = vector.broadcast %cst_32 : f32 to vector<8x324xf32>
    %86 = arith.addf %85, %84 : vector<8x324xf32>
    %87 = arith.divf %85, %86 : vector<8x324xf32>
    %88 = arith.mulf %82, %87 : vector<8x324xf32>
    %89 = vector.broadcast %0 : vector<1x324xf32> to vector<8x324xf32>
    %90 = arith.mulf %88, %89 : vector<8x324xf32>
    %c0_33 = arith.constant 0 : index
    %c0_34 = arith.constant 0 : index
    %91 = vector.load %arg12[%c0_33, %c0_34] : memref<8x72xbf16, #tpu.memory_space<vmem>>, vector<8x72xbf16>
    %c0_35 = arith.constant 0 : index
    %c0_36 = arith.constant 0 : index
    %92 = vector.load %arg13[%c0_35, %c0_36] : memref<8x1xf32, #tpu.memory_space<vmem>>, vector<8x1xf32>
    %c0_37 = arith.constant 0 : index
    %c0_38 = arith.constant 0 : index
    %93 = vector.load %arg14[%c0_37, %c0_38] : memref<8x1xf32, #tpu.memory_space<vmem>>, vector<8x1xf32>
    %c0_39 = arith.constant 0 : index
    %c0_40 = arith.constant 0 : index
    %94 = vector.load %arg15[%c0_39, %c0_40] : memref<8x1xf32, #tpu.memory_space<vmem>>, vector<8x1xf32>
    %95 = arith.truncf %90 : vector<8x324xf32> to vector<8x324xbf16>
    %cst_41 = arith.constant 0.000000e+00 : bf16
    %96 = vector.broadcast %cst_41 : bf16 to vector<8x19xbf16>
    %97 = tpu.concatenate %96, %95, %96 in 1 : vector<8x19xbf16>, vector<8x324xbf16>, vector<8x19xbf16> -> vector<8x362xbf16>
    %98 = vector.extract_strided_slice %97 {offsets = [0, 0], sizes = [8, 324], strides = [1, 1]} : vector<8x362xbf16> to vector<8x324xbf16>
    %99 = vector.extract_strided_slice %97 {offsets = [0, 1], sizes = [8, 324], strides = [1, 1]} : vector<8x362xbf16> to vector<8x324xbf16>
    %100 = vector.extract_strided_slice %97 {offsets = [0, 2], sizes = [8, 324], strides = [1, 1]} : vector<8x362xbf16> to vector<8x324xbf16>
    %101 = vector.extract_strided_slice %97 {offsets = [0, 18], sizes = [8, 324], strides = [1, 1]} : vector<8x362xbf16> to vector<8x324xbf16>
    %102 = vector.extract_strided_slice %97 {offsets = [0, 19], sizes = [8, 324], strides = [1, 1]} : vector<8x362xbf16> to vector<8x324xbf16>
    %103 = vector.extract_strided_slice %97 {offsets = [0, 20], sizes = [8, 324], strides = [1, 1]} : vector<8x362xbf16> to vector<8x324xbf16>
    %104 = vector.extract_strided_slice %97 {offsets = [0, 36], sizes = [8, 324], strides = [1, 1]} : vector<8x362xbf16> to vector<8x324xbf16>
    %105 = vector.extract_strided_slice %97 {offsets = [0, 37], sizes = [8, 324], strides = [1, 1]} : vector<8x362xbf16> to vector<8x324xbf16>
    %106 = vector.extract_strided_slice %97 {offsets = [0, 38], sizes = [8, 324], strides = [1, 1]} : vector<8x362xbf16> to vector<8x324xbf16>
    %107 = tpu.concatenate %98, %99, %100, %101, %102, %103, %104, %105, %106 in 0 : vector<8x324xbf16>, vector<8x324xbf16>, vector<8x324xbf16>, vector<8x324xbf16>, vector<8x324xbf16>, vector<8x324xbf16>, vector<8x324xbf16>, vector<8x324xbf16>, vector<8x324xbf16> -> vector<72x324xbf16>
    %cst_42 = arith.constant dense<0.000000e+00> : vector<8x324xf32>
    %108 = tpu.matmul %91, %107, %cst_42 {dimension_numbers = #tpu.dot_dimension_numbers<[1], [0], [0], [1], [0, 0, 1, 1], [], []>} : vector<8x72xbf16>, vector<72x324xbf16>, vector<8x324xf32> -> vector<8x324xf32>
    %109 = vector.broadcast %92 : vector<8x1xf32> to vector<8x324xf32>
    %110 = arith.addf %108, %109 : vector<8x324xf32>
    %111 = vector.broadcast %0 : vector<1x324xf32> to vector<8x324xf32>
    %112 = arith.mulf %110, %111 : vector<8x324xf32>
    %cst_43 = arith.constant dense<0.000000e+00> : vector<8xf32>
    %113 = vector.multi_reduction <add>, %112, %cst_43 [1] : vector<8x324xf32> to vector<8xf32>
    %114 = vector.shape_cast %113 : vector<8xf32> to vector<8x1xf32>
    %115 = arith.mulf %112, %112 : vector<8x324xf32>
    %cst_44 = arith.constant dense<0.000000e+00> : vector<8xf32>
    %116 = vector.multi_reduction <add>, %115, %cst_44 [1] : vector<8x324xf32> to vector<8xf32>
    %117 = vector.shape_cast %116 : vector<8xf32> to vector<8x1xf32>
    %118 = vector.broadcast %114 : vector<8x1xf32> to vector<8x4xf32>
    %119 = arith.mulf %13, %118 : vector<8x4xf32>
    %cst_45 = arith.constant dense<0.000000e+00> : vector<4xf32>
    %120 = vector.multi_reduction <add>, %119, %cst_45 [0] : vector<8x4xf32> to vector<4xf32>
    %121 = vector.shape_cast %120 : vector<4xf32> to vector<1x4xf32>
    %122 = vector.broadcast %117 : vector<8x1xf32> to vector<8x4xf32>
    %123 = arith.mulf %13, %122 : vector<8x4xf32>
    %cst_46 = arith.constant dense<0.000000e+00> : vector<4xf32>
    %124 = vector.multi_reduction <add>, %123, %cst_46 [0] : vector<8x4xf32> to vector<4xf32>
    %125 = vector.shape_cast %124 : vector<4xf32> to vector<1x4xf32>
    %cst_47 = arith.constant 0.001953125 : f32
    %126 = vector.broadcast %cst_47 : f32 to vector<1x4xf32>
    %127 = arith.mulf %121, %126 : vector<1x4xf32>
    %cst_48 = arith.constant 0.001953125 : f32
    %128 = vector.broadcast %cst_48 : f32 to vector<1x4xf32>
    %129 = arith.mulf %125, %128 : vector<1x4xf32>
    %130 = arith.mulf %127, %127 : vector<1x4xf32>
    %131 = arith.subf %129, %130 : vector<1x4xf32>
    %cst_49 = arith.constant 9.99999974E-6 : f32
    %132 = vector.broadcast %cst_49 : f32 to vector<1x4xf32>
    %133 = arith.addf %131, %132 : vector<1x4xf32>
    %134 = math.rsqrt %133 : vector<1x4xf32>
    %135 = vector.broadcast %127 : vector<1x4xf32> to vector<8x4xf32>
    %136 = arith.mulf %13, %135 : vector<8x4xf32>
    %cst_50 = arith.constant dense<0.000000e+00> : vector<8xf32>
    %137 = vector.multi_reduction <add>, %136, %cst_50 [1] : vector<8x4xf32> to vector<8xf32>
    %138 = vector.shape_cast %137 : vector<8xf32> to vector<8x1xf32>
    %139 = vector.broadcast %134 : vector<1x4xf32> to vector<8x4xf32>
    %140 = arith.mulf %13, %139 : vector<8x4xf32>
    %cst_51 = arith.constant dense<0.000000e+00> : vector<8xf32>
    %141 = vector.multi_reduction <add>, %140, %cst_51 [1] : vector<8x4xf32> to vector<8xf32>
    %142 = vector.shape_cast %141 : vector<8xf32> to vector<8x1xf32>
    %143 = arith.mulf %142, %93 : vector<8x1xf32>
    %144 = arith.mulf %138, %143 : vector<8x1xf32>
    %145 = arith.subf %94, %144 : vector<8x1xf32>
    %146 = vector.broadcast %143 : vector<8x1xf32> to vector<8x324xf32>
    %147 = arith.mulf %112, %146 : vector<8x324xf32>
    %148 = vector.broadcast %145 : vector<8x1xf32> to vector<8x324xf32>
    %149 = arith.addf %147, %148 : vector<8x324xf32>
    %150 = arith.negf %149 : vector<8x324xf32>
    %151 = math.exp %150 : vector<8x324xf32>
    %cst_52 = arith.constant 1.000000e+00 : f32
    %152 = vector.broadcast %cst_52 : f32 to vector<8x324xf32>
    %153 = arith.addf %152, %151 : vector<8x324xf32>
    %154 = arith.divf %152, %153 : vector<8x324xf32>
    %155 = arith.mulf %149, %154 : vector<8x324xf32>
    %156 = vector.broadcast %0 : vector<1x324xf32> to vector<8x324xf32>
    %157 = arith.mulf %155, %156 : vector<8x324xf32>
    %c0_53 = arith.constant 0 : index
    %c0_54 = arith.constant 0 : index
    %158 = vector.load %arg12[%c0_53, %c0_54] : memref<8x72xbf16, #tpu.memory_space<vmem>>, vector<8x72xbf16>
    %c0_55 = arith.constant 0 : index
    %c0_56 = arith.constant 0 : index
    %159 = vector.load %arg13[%c0_55, %c0_56] : memref<8x1xf32, #tpu.memory_space<vmem>>, vector<8x1xf32>
    %c0_57 = arith.constant 0 : index
    %c0_58 = arith.constant 0 : index
    %160 = vector.load %arg14[%c0_57, %c0_58] : memref<8x1xf32, #tpu.memory_space<vmem>>, vector<8x1xf32>
    %c0_59 = arith.constant 0 : index
    %c0_60 = arith.constant 0 : index
    %161 = vector.load %arg15[%c0_59, %c0_60] : memref<8x1xf32, #tpu.memory_space<vmem>>, vector<8x1xf32>
    %162 = arith.truncf %157 : vector<8x324xf32> to vector<8x324xbf16>
    %cst_61 = arith.constant 0.000000e+00 : bf16
    %163 = vector.broadcast %cst_61 : bf16 to vector<8x19xbf16>
    %164 = tpu.concatenate %163, %162, %163 in 1 : vector<8x19xbf16>, vector<8x324xbf16>, vector<8x19xbf16> -> vector<8x362xbf16>
    %165 = vector.extract_strided_slice %164 {offsets = [0, 0], sizes = [8, 324], strides = [1, 1]} : vector<8x362xbf16> to vector<8x324xbf16>
    %166 = vector.extract_strided_slice %164 {offsets = [0, 1], sizes = [8, 324], strides = [1, 1]} : vector<8x362xbf16> to vector<8x324xbf16>
    %167 = vector.extract_strided_slice %164 {offsets = [0, 2], sizes = [8, 324], strides = [1, 1]} : vector<8x362xbf16> to vector<8x324xbf16>
    %168 = vector.extract_strided_slice %164 {offsets = [0, 18], sizes = [8, 324], strides = [1, 1]} : vector<8x362xbf16> to vector<8x324xbf16>
    %169 = vector.extract_strided_slice %164 {offsets = [0, 19], sizes = [8, 324], strides = [1, 1]} : vector<8x362xbf16> to vector<8x324xbf16>
    %170 = vector.extract_strided_slice %164 {offsets = [0, 20], sizes = [8, 324], strides = [1, 1]} : vector<8x362xbf16> to vector<8x324xbf16>
    %171 = vector.extract_strided_slice %164 {offsets = [0, 36], sizes = [8, 324], strides = [1, 1]} : vector<8x362xbf16> to vector<8x324xbf16>
    %172 = vector.extract_strided_slice %164 {offsets = [0, 37], sizes = [8, 324], strides = [1, 1]} : vector<8x362xbf16> to vector<8x324xbf16>
    %173 = vector.extract_strided_slice %164 {offsets = [0, 38], sizes = [8, 324], strides = [1, 1]} : vector<8x362xbf16> to vector<8x324xbf16>
    %174 = tpu.concatenate %165, %166, %167, %168, %169, %170, %171, %172, %173 in 0 : vector<8x324xbf16>, vector<8x324xbf16>, vector<8x324xbf16>, vector<8x324xbf16>, vector<8x324xbf16>, vector<8x324xbf16>, vector<8x324xbf16>, vector<8x324xbf16>, vector<8x324xbf16> -> vector<72x324xbf16>
    %cst_62 = arith.constant dense<0.000000e+00> : vector<8x324xf32>
    %175 = tpu.matmul %158, %174, %cst_62 {dimension_numbers = #tpu.dot_dimension_numbers<[1], [0], [0], [1], [0, 0, 1, 1], [], []>} : vector<8x72xbf16>, vector<72x324xbf16>, vector<8x324xf32> -> vector<8x324xf32>
    %176 = vector.broadcast %159 : vector<8x1xf32> to vector<8x324xf32>
    %177 = arith.addf %175, %176 : vector<8x324xf32>
    %178 = vector.broadcast %0 : vector<1x324xf32> to vector<8x324xf32>
    %179 = arith.mulf %177, %178 : vector<8x324xf32>
    %cst_63 = arith.constant dense<0.000000e+00> : vector<8xf32>
    %180 = vector.multi_reduction <add>, %179, %cst_63 [1] : vector<8x324xf32> to vector<8xf32>
    %181 = vector.shape_cast %180 : vector<8xf32> to vector<8x1xf32>
    %182 = arith.mulf %179, %179 : vector<8x324xf32>
    %cst_64 = arith.constant dense<0.000000e+00> : vector<8xf32>
    %183 = vector.multi_reduction <add>, %182, %cst_64 [1] : vector<8x324xf32> to vector<8xf32>
    %184 = vector.shape_cast %183 : vector<8xf32> to vector<8x1xf32>
    %185 = vector.broadcast %181 : vector<8x1xf32> to vector<8x4xf32>
    %186 = arith.mulf %13, %185 : vector<8x4xf32>
    %cst_65 = arith.constant dense<0.000000e+00> : vector<4xf32>
    %187 = vector.multi_reduction <add>, %186, %cst_65 [0] : vector<8x4xf32> to vector<4xf32>
    %188 = vector.shape_cast %187 : vector<4xf32> to vector<1x4xf32>
    %189 = vector.broadcast %184 : vector<8x1xf32> to vector<8x4xf32>
    %190 = arith.mulf %13, %189 : vector<8x4xf32>
    %cst_66 = arith.constant dense<0.000000e+00> : vector<4xf32>
    %191 = vector.multi_reduction <add>, %190, %cst_66 [0] : vector<8x4xf32> to vector<4xf32>
    %192 = vector.shape_cast %191 : vector<4xf32> to vector<1x4xf32>
    %cst_67 = arith.constant 0.001953125 : f32
    %193 = vector.broadcast %cst_67 : f32 to vector<1x4xf32>
    %194 = arith.mulf %188, %193 : vector<1x4xf32>
    %cst_68 = arith.constant 0.001953125 : f32
    %195 = vector.broadcast %cst_68 : f32 to vector<1x4xf32>
    %196 = arith.mulf %192, %195 : vector<1x4xf32>
    %197 = arith.mulf %194, %194 : vector<1x4xf32>
    %198 = arith.subf %196, %197 : vector<1x4xf32>
    %cst_69 = arith.constant 9.99999974E-6 : f32
    %199 = vector.broadcast %cst_69 : f32 to vector<1x4xf32>
    %200 = arith.addf %198, %199 : vector<1x4xf32>
    %201 = math.rsqrt %200 : vector<1x4xf32>
    %202 = vector.broadcast %194 : vector<1x4xf32> to vector<8x4xf32>
    %203 = arith.mulf %13, %202 : vector<8x4xf32>
    %cst_70 = arith.constant dense<0.000000e+00> : vector<8xf32>
    %204 = vector.multi_reduction <add>, %203, %cst_70 [1] : vector<8x4xf32> to vector<8xf32>
    %205 = vector.shape_cast %204 : vector<8xf32> to vector<8x1xf32>
    %206 = vector.broadcast %201 : vector<1x4xf32> to vector<8x4xf32>
    %207 = arith.mulf %13, %206 : vector<8x4xf32>
    %cst_71 = arith.constant dense<0.000000e+00> : vector<8xf32>
    %208 = vector.multi_reduction <add>, %207, %cst_71 [1] : vector<8x4xf32> to vector<8xf32>
    %209 = vector.shape_cast %208 : vector<8xf32> to vector<8x1xf32>
    %210 = arith.mulf %209, %160 : vector<8x1xf32>
    %211 = arith.mulf %205, %210 : vector<8x1xf32>
    %212 = arith.subf %161, %211 : vector<8x1xf32>
    %213 = vector.broadcast %210 : vector<8x1xf32> to vector<8x324xf32>
    %214 = arith.mulf %179, %213 : vector<8x324xf32>
    %215 = vector.broadcast %212 : vector<8x1xf32> to vector<8x324xf32>
    %216 = arith.addf %214, %215 : vector<8x324xf32>
    %217 = arith.negf %216 : vector<8x324xf32>
    %218 = math.exp %217 : vector<8x324xf32>
    %cst_72 = arith.constant 1.000000e+00 : f32
    %219 = vector.broadcast %cst_72 : f32 to vector<8x324xf32>
    %220 = arith.addf %219, %218 : vector<8x324xf32>
    %221 = arith.divf %219, %220 : vector<8x324xf32>
    %222 = arith.mulf %216, %221 : vector<8x324xf32>
    %c0_73 = arith.constant 0 : index
    %c0_74 = arith.constant 0 : index
    %c0_75 = arith.constant 0 : index
    %223 = vector.load %arg3[%c0_73, %c0_74, %c0_75] : memref<1x1x64xf32, #tpu.memory_space<vmem>>, vector<1x1x64xf32>
    %224 = vector.shape_cast %223 : vector<1x1x64xf32> to vector<1x64xf32>
    %225 = arith.negf %224 : vector<1x64xf32>
    %226 = math.exp %225 : vector<1x64xf32>
    %cst_76 = arith.constant 1.000000e+00 : f32
    %227 = vector.broadcast %cst_76 : f32 to vector<1x64xf32>
    %228 = arith.addf %227, %226 : vector<1x64xf32>
    %229 = arith.divf %227, %228 : vector<1x64xf32>
    %230 = arith.mulf %224, %229 : vector<1x64xf32>
    %c0_77 = arith.constant 0 : index
    %c0_78 = arith.constant 0 : index
    %231 = vector.load %arg16[%c0_77, %c0_78] : memref<8x64xf32, #tpu.memory_space<vmem>>, vector<8x64xf32>
    %232 = vector.broadcast %230 : vector<1x64xf32> to vector<8x64xf32>
    %233 = arith.mulf %231, %232 : vector<8x64xf32>
    %cst_79 = arith.constant dense<0.000000e+00> : vector<8xf32>
    %234 = vector.multi_reduction <add>, %233, %cst_79 [1] : vector<8x64xf32> to vector<8xf32>
    %235 = vector.shape_cast %234 : vector<8xf32> to vector<8x1xf32>
    %c0_80 = arith.constant 0 : index
    %c0_81 = arith.constant 0 : index
    %236 = vector.load %arg17[%c0_80, %c0_81] : memref<8x1xf32, #tpu.memory_space<vmem>>, vector<8x1xf32>
    %237 = arith.addf %235, %236 : vector<8x1xf32>
    %c0_82 = arith.constant 0 : index
    %c0_83 = arith.constant 0 : index
    %238 = vector.load %arg6[%c0_82, %c0_83] : memref<324x256xf32, #tpu.memory_space<vmem>>, vector<324x256xf32>
    %cst_84 = arith.constant dense<0.000000e+00> : vector<8x256xf32>
    %239 = tpu.matmul %222, %238, %cst_84 {dimension_numbers = #tpu.dot_dimension_numbers<[1], [0], [0], [1], [0, 0, 1, 1], [], []>} : vector<8x324xf32>, vector<324x256xf32>, vector<8x256xf32> -> vector<8x256xf32>
    %240 = vector.broadcast %237 : vector<8x1xf32> to vector<8x256xf32>
    %241 = arith.addf %239, %240 : vector<8x256xf32>
    %c0_85 = arith.constant 0 : index
    %c0_86 = arith.constant 0 : index
    %c0_87 = arith.constant 0 : index
    %242 = vector.load %arg18[%c0_85, %c0_86, %c0_87] : memref<1x8x256xf32, #tpu.memory_space<vmem>>, vector<1x8x256xf32>
    %243 = vector.shape_cast %242 : vector<1x8x256xf32> to vector<8x256xf32>
    %244 = vector.shape_cast %241 : vector<8x256xf32> to vector<1x8x256xf32>
    tpu.vector_store %arg18[%c0_85, %c0_86, %c0_87], %244 {strides = array<i32>} : memref<1x8x256xf32, #tpu.memory_space<vmem>>, vector<1x8x256xf32>,
    return
  }
  func.func @transform_0(%arg0: i32) -> (i32, i32, i32) {
    %c0_i32 = arith.constant 0 : i32
    %c0_i32_0 = arith.constant 0 : i32
    %c0_i32_1 = arith.constant 0 : i32
    return %arg0, %c0_i32, %c0_i32_0 : i32, i32, i32
  }
  func.func @transform_1(%arg0: i32) -> (i32, i32, i32) {
    %c0_i32 = arith.constant 0 : i32
    %c0_i32_0 = arith.constant 0 : i32
    %c0_i32_1 = arith.constant 0 : i32
    return %arg0, %c0_i32, %c0_i32_0 : i32, i32, i32
  }
  func.func @transform_2(%arg0: i32) -> (i32, i32, i32) {
    %c0_i32 = arith.constant 0 : i32
    %c0_i32_0 = arith.constant 0 : i32
    %c0_i32_1 = arith.constant 0 : i32
    return %arg0, %c0_i32, %c0_i32_0 : i32, i32, i32
  }
  func.func @transform_3(%arg0: i32) -> (i32, i32) {
    %c0_i32 = arith.constant 0 : i32
    %c0_i32_0 = arith.constant 0 : i32
    %c0_i32_1 = arith.constant 0 : i32
    return %c0_i32, %c0_i32_0 : i32, i32
  }
  func.func @transform_4(%arg0: i32) -> (i32, i32) {
    %c0_i32 = arith.constant 0 : i32
    %c0_i32_0 = arith.constant 0 : i32
    %c0_i32_1 = arith.constant 0 : i32
    return %c0_i32, %c0_i32_0 : i32, i32
  }
  func.func @transform_5(%arg0: i32) -> (i32, i32) {
    %c0_i32 = arith.constant 0 : i32
    %c0_i32_0 = arith.constant 0 : i32
    %c0_i32_1 = arith.constant 0 : i32
    return %c0_i32, %c0_i32_0 : i32, i32
  }
  func.func @transform_6(%arg0: i32) -> (i32, i32) {
    %c0_i32 = arith.constant 0 : i32
    %c0_i32_0 = arith.constant 0 : i32
    %c0_i32_1 = arith.constant 0 : i32
    return %c0_i32, %c0_i32_0 : i32, i32
  }
  func.func @transform_7(%arg0: i32) -> (i32, i32) {
    %c0_i32 = arith.constant 0 : i32
    %c0_i32_0 = arith.constant 0 : i32
    %c0_i32_1 = arith.constant 0 : i32
    return %c0_i32, %c0_i32_0 : i32, i32
  }
  func.func @transform_8(%arg0: i32) -> (i32, i32) {
    %c0_i32 = arith.constant 0 : i32
    %c0_i32_0 = arith.constant 0 : i32
    %c0_i32_1 = arith.constant 0 : i32
    return %c0_i32, %c0_i32_0 : i32, i32
  }
  func.func @transform_9(%arg0: i32) -> (i32, i32) {
    %c0_i32 = arith.constant 0 : i32
    %c0_i32_0 = arith.constant 0 : i32
    %c0_i32_1 = arith.constant 0 : i32
    return %c0_i32, %c0_i32_0 : i32, i32
  }
  func.func @transform_10(%arg0: i32) -> (i32, i32) {
    %c0_i32 = arith.constant 0 : i32
    %c0_i32_0 = arith.constant 0 : i32
    %c0_i32_1 = arith.constant 0 : i32
    return %c0_i32, %c0_i32_0 : i32, i32
  }
  func.func @transform_11(%arg0: i32) -> (i32, i32) {
    %c0_i32 = arith.constant 0 : i32
    %c0_i32_0 = arith.constant 0 : i32
    %c0_i32_1 = arith.constant 0 : i32
    return %c0_i32, %c0_i32_0 : i32, i32
  }
  func.func @transform_12(%arg0: i32) -> (i32, i32) {
    %c0_i32 = arith.constant 0 : i32
    %c0_i32_0 = arith.constant 0 : i32
    %c0_i32_1 = arith.constant 0 : i32
    return %c0_i32, %c0_i32_0 : i32, i32
  }
  func.func @transform_13(%arg0: i32) -> (i32, i32) {
    %c0_i32 = arith.constant 0 : i32
    %c0_i32_0 = arith.constant 0 : i32
    %c0_i32_1 = arith.constant 0 : i32
    return %c0_i32, %c0_i32_0 : i32, i32
  }
  func.func @transform_14(%arg0: i32) -> (i32, i32) {
    %c0_i32 = arith.constant 0 : i32
    %c0_i32_0 = arith.constant 0 : i32
    %c0_i32_1 = arith.constant 0 : i32
    return %c0_i32, %c0_i32_0 : i32, i32
  }
  func.func @transform_15(%arg0: i32) -> (i32, i32) {
    %c0_i32 = arith.constant 0 : i32
    %c0_i32_0 = arith.constant 0 : i32
    %c0_i32_1 = arith.constant 0 : i32
    return %c0_i32, %c0_i32_0 : i32, i32
  }
  func.func @transform_16(%arg0: i32) -> (i32, i32) {
    %c0_i32 = arith.constant 0 : i32
    %c0_i32_0 = arith.constant 0 : i32
    %c0_i32_1 = arith.constant 0 : i32
    return %c0_i32, %c0_i32_0 : i32, i32
  }
  func.func @transform_17(%arg0: i32) -> (i32, i32, i32) {
    %c0_i32 = arith.constant 0 : i32
    %c0_i32_0 = arith.constant 0 : i32
    %c0_i32_1 = arith.constant 0 : i32
    return %arg0, %c0_i32, %c0_i32_0 : i32, i32, i32
  }
}

</mosaic_0001>

<bundles_post_ra>
// kernel: up_forward_fn.1
= control target key start
LH: loop header
LB: loop body
LE: loop exit
PB: predicated region body
PF: predicated region fallthrough
CT: control target
= control target key end

     0   :  { %s2849_s24 = smov 0   ;;  %s3787_s0 = inlined_call_operand.vmem [shape: f32[2,4,64], index: 0, kind: input, shape index: {}]   ;;  %s3788_s1 = inlined_call_operand.vmem [shape: bf16[2,4,256], index: 1, kind: input, shape index: {}]   ;;  %s3789_s2 = inlined_call_operand.vmem [shape: f32[2,1,64], index: 2, kind: input, shape index: {}]   ;;  %s3790_s3 = inlined_call_operand.vmem [shape: f32[64,256], index: 3, kind: input, shape index: {}]   ;;  %s3791_s4 = inlined_call_operand.vmem [shape: bf16[256,324], index: 4, kind: input, shape index: {}]   ;;  %s3792_s5 = inlined_call_operand.vmem [shape: f32[324,256], index: 5, kind: input, shape index: {}]   ;;  %s3793_s6 = inlined_call_operand.vmem [shape: f32[1,324], index: 6, kind: input, shape index: {}]   ;;  %s3794_s7 = inlined_call_operand.vmem [shape: bf16[8,72], index: 7, kind: input, shape index: {}]   ;;  %s3795_s8 = inlined_call_operand.vmem [shape: f32[8,1], index: 8, kind: input, shape index: {}]   ;;  %s3796_s9 = inlined_call_operand.vmem [shape: f32[8,1], index: 9, kind: input, shape index: {}]   ;;  %s3797_s10 = inlined_call_operand.vmem [shape: f32[8,1], index: 10, kind: input, shape index: {}]   ;;  %s3798_s11 = inlined_call_operand.vmem [shape: bf16[8,72], index: 11, kind: input, shape index: {}]   ;;  %s3799_s12 = inlined_call_operand.vmem [shape: f32[8,1], index: 12, kind: input, shape index: {}]   ;;  %s3800_s13 = inlined_call_operand.vmem [shape: f32[8,1], index: 13, kind: input, shape index: {}]   ;;  %s3801_s14 = inlined_call_operand.vmem [shape: f32[8,1], index: 14, kind: input, shape index: {}]   ;;  %s3802_s15 = inlined_call_operand.vmem [shape: f32[8,64], index: 15, kind: input, shape index: {}]   ;;  %s3803_s16 = inlined_call_operand.vmem [shape: f32[8,1], index: 16, kind: input, shape index: {}]   ;;  %s3804_s17 = inlined_call_operand.vmem [shape: f32[2,8,256], index: 17, kind: output, shape index: {}]  }
   0x1   :  { %3808 = sst [smem:[#allocation2_spill]] %s3787_s0 }
   0x2   :  { %3809 = sst [smem:[#allocation3_spill]] %s3788_s1 }
   0x3 LB: > { %s2438_s25 = sadd.s32 4294967295, %s2745_s24   ;;  %p2442_p0 = scmp.ge.s32.totalorder %s2745_s24, 1  ;;  %s2745_s24 = sphi %s2849_s24, %s27_s24  }
   0x4   : > { %p504_p1 = scmp.lt.s32.totalorder %s2745_s24, 3 }
   0x6   : > { %p505_p2 = pnand %p2442_p0, %p504_p1 }
   0x7   : > { %p563_p3 = scmp.lt.s32.totalorder (!%p505_p2), %s2438_s25, 1  ;;  %s3810_s27 = sld [smem:[#allocation2_spill]] (!%p505_p2) }
   0x8   : > { %508 = sbr.rel (%p505_p2) target bundleno = 3557 (0xde5), region = 88  ;;  %s2749_s0 = smov (!%p505_p2), 90  }
   0x9   : > { %s2750_s18 = smov (!%p505_p2), 92   ;;  %s2752_s19 = smov (!%p505_p2), 109  }
   0xa   : > { %s2753_s1 = smov (!%p505_p2), 108   ;;  %s2754_s20 = smov (!%p505_p2), 126  }
   0xb   : > { %s2755_s21 = smov (!%p505_p2), 110   ;;  %s2758_s22 = smov (!%p505_p2), 127  }
   0xd   : > { %v610_v0 = vld [vmem:[%s3790_s3 + $0x78] sm:$0xff]  ;;  %v609_v1 = vld [vmem:[%s3790_s3 + $0x70] sm:$0xff]  ;;  %v608_v2 = vld [vmem:[%s3790_s3 + $0x68] sm:$0xff]  ;;  %v2747_v4 = vmov 0.0   ;;  %s3823_s25 = smov (!%p563_p3, %s2438_s25), 1  ;;  %vm3805_vm0 = vcmask 523264  }
   0xe   : > { %631 = vmatprep.subr.mxu1 %v610_v0  ;;  %v607_v3 = vld [vmem:[%s3790_s3 + $0x60] sm:$0xff]  ;;  %679 = vmatprep.mubr.f32.mxu1 %v2747_v4  ;;  %v606_v5 = vld [vmem:[%s3790_s3 + $0x58] sm:$0xff]  ;;  %v605_v6 = vld [vmem:[%s3790_s3 + $0x50] sm:$0xff]  ;;  %s2443_s30 = sshll.u32 %s3823_s25, 2  ;;  %vm702_vm1 = vcmask 1041408   ;;  %vm1128_vm2 = vcmask 154624  }
   0xf   : > { %632 = vmatpush1.msra.mxu1 %v609_v1  ;;  %v604_v7 = vld [vmem:[%s3790_s3 + $0x48] sm:$0xff]  ;;  %v603_v8 = vld [vmem:[%s3790_s3 + $0x40] sm:$0xff]  ;;  %v602_v9 = vld [vmem:[%s3790_s3 + $0x38] sm:$0xff]  ;;  %s566_s28 = scalar_lea.vmem %s3810_s27, %s2443_s30  ;;  %s3811_s27 = sld [smem:[#allocation3_spill]]  ;;  %vm1135_vm3 = vcmask 711680   ;;  %vm3806_vm4 = vmmov 0  }
  0x10   : > { %633 = vmatprep.subr.mxu1 %v608_v2  ;;  %v601_v10 = vld [vmem:[%s3790_s3 + $0x30] sm:$0xff]  ;;  %v600_v11 = vld [vmem:[%s3790_s3 + $0x28] sm:$0xff]  ;;  %v599_v12 = vld [vmem:[%s3790_s3 + $0x20] sm:$0xff]  ;;  %vm1212_vm5 = vcmask 736256   ;;  %vm1215_vm6 = vcmask 1043456   ;;  %vm1203_vm7 = vcmask 744448  }
  0x11   : > { %634 = vmatpush1.msra.mxu1 %v607_v3  ;;  %v598_v13 = vld [vmem:[%s3790_s3 + $0x18] sm:$0xff]  ;;  %v597_v14 = vld [vmem:[%s3790_s3 + $0x10] sm:$0xff]  ;;  %v596_v15 = vld [vmem:[%s3790_s3 + $0x8] sm:$0xff]  ;;  %vm1194_vm8 = vcmask 752640   ;;  %vm1185_vm9 = vcmask 883712   ;;  %vm1176_vm10 = vcmask 891904  }
  0x12   : > { %635 = vmatprep.subr.mxu1 %v606_v5  ;;  %v595_v16 = vld [vmem:[%s3790_s3] sm:$0xff]  ;;  %v2631_v18 = vld [vmem:[%s3791_s4 + $0xac] ss:$12 sps:$4 sm:$0xff]   ;;  %v2629_v19 = vld [vmem:[%s3791_s4 + $0xa8] ss:$12 sps:$4 sm:$0xff]   ;;  %vm1167_vm11 = vcmask 900096  }
  0x13   : > { %636 = vmatpush1.msra.mxu1 %v605_v6  ;;  %v594_v17 = vld [vmem:[%s566_s28] sm:$0xf]  ;;  %v2632_v21 = vld [vmem:[%s3791_s4 + $0x90] ss:$12 sps:$4 sm:$0xff]   ;;  %v2635_v25 = vld [vmem:[%s3791_s4 + $0x78] ss:$12 sps:$4 sm:$0xff]  }
  0x14   : > { %637 = vmatprep.subr.mxu1 %v604_v7  ;;  %v2634_v20 = vld [vmem:[%s3791_s4 + $0x94] ss:$12 sps:$4 sm:$0xff]   ;;  %v2637_v22 = vld [vmem:[%s3791_s4 + $0x7c] ss:$12 sps:$4 sm:$0xff]   ;;  %v2640_v26 = vld [vmem:[%s3791_s4 + $0x64] ss:$12 sps:$4 sm:$0xff]  }
  0x15   : > { %638 = vmatpush1.msra.mxu1 %v603_v8  ;;  %v2656_v23 = vld [vmem:[%s3791_s4 + $0x170] ss:$12 sps:$4 sm:$0xff]   ;;  %v2661_v27 = vld [vmem:[%s3791_s4 + $0x158] ss:$12 sps:$4 sm:$0xff]   ;;  %v2638_v29 = vld [vmem:[%s3791_s4 + $0x60] ss:$12 sps:$4 sm:$0xff]   ;;  %s571_s29 = scalar_lea.vmem %s3811_s27, %s2443_s30  ;;  %s574_s27 = scalar_lea.vmem %s3789_s2, %s3823_s25 }
  0x16   : > { %639 = vmatprep.subr.mxu1 %v602_v9  ;;  %v2657_v24 = vld [vmem:[%s3791_s4 + $0xb0] ss:$12 sps:$4 sm:$0xff]   ;;  %2525 = vmatprep.subr.bf16.mxu0 %v2656_v23  ;;  %v2662_v28 = vld [vmem:[%s3791_s4 + $0x98] ss:$12 sps:$4 sm:$0xff]   ;;  %v2666_v30 = vld [vmem:[%s3791_s4 + $0x140] ss:$12 sps:$4 sm:$0xff]  }
  0x17   : > { %640 = vmatpush1.msra.mxu1 %v601_v10  ;;  %2526 = vmatpush3.bf16.msra.mxu0 %v2657_v24  ;;  %v2667_v31 = vld [vmem:[%s3791_s4 + $0x80] ss:$12 sps:$4 sm:$0xff]   ;;  %v2641_v33 = vld [vmem:[%s3791_s4 + $0x48] ss:$12 sps:$4 sm:$0xff]   ;;  %v2676_v37 = vld [vmem:[%s3791_s4 + $0x110] ss:$12 sps:$4 sm:$0xff]  }
  0x18   : > { %641 = vmatprep.subr.mxu1 %v600_v11  ;;  %2527 = vmatprep.subr.bf16.mxu0 %v2661_v27  ;;  %v2643_v32 = vld [vmem:[%s3791_s4 + $0x4c] ss:$12 sps:$4 sm:$0xff]   ;;  %v2671_v34 = vld [vmem:[%s3791_s4 + $0x128] ss:$12 sps:$4 sm:$0xff]   ;;  %v2644_v38 = vld [vmem:[%s3791_s4 + $0x30] ss:$12 sps:$4 sm:$0xff]  }
  0x19   : > { %642 = vmatpush1.msra.mxu1 %v599_v12  ;;  %v2672_v35 = vld [vmem:[%s3791_s4 + $0x68] ss:$12 sps:$4 sm:$0xff]   ;;  %v2677_v40 = vld [vmem:[%s3791_s4 + $0x50] ss:$12 sps:$4 sm:$0xff]   ;;  %v2681_v41 = vld [vmem:[%s3791_s4 + $0xf8] ss:$12 sps:$4 sm:$0xff]  }
  0x1a   : > { %643 = vmatprep.subr.mxu1 %v598_v13  ;;  %v2646_v36 = vld [vmem:[%s3791_s4 + $0x34] ss:$12 sps:$4 sm:$0xff]   ;;  %v2649_v39 = vld [vmem:[%s3791_s4 + $0x1c] ss:$12 sps:$4 sm:$0xff]   ;;  %v2647_v42 = vld [vmem:[%s3791_s4 + $0x18] ss:$12 sps:$4 sm:$0xff]  }
  0x1b   : > { %644 = vmatpush1.msra.mxu1 %v597_v14  ;;  %2528 = vmatpush3.bf16.msra.mxu0 %v2662_v28  ;;  %v2682_v43 = vld [vmem:[%s3791_s4 + $0x38] ss:$12 sps:$4 sm:$0xff]   ;;  %v2650_v45 = vld [vmem:[%s3791_s4] ss:$12 sps:$4 sm:$0xff]   ;;  %v2653_v47 = vld [vmem:[%s3791_s4 + $0x168] ss:$12 sps:$4 sm:$0xff]  }
  0x1c   : > { %645 = vmatprep.subr.mxu1 %v596_v15  ;;  %2529 = vmatprep.subr.bf16.mxu0 %v2666_v30  ;;  %v2652_v44 = vld [vmem:[%s3791_s4 + $0x4] ss:$12 sps:$4 sm:$0xff]   ;;  %v2655_v46 = vld [vmem:[%s3791_s4 + $0x16c] ss:$12 sps:$4 sm:$0xff]   ;;  %v2660_v48 = vld [vmem:[%s3791_s4 + $0x154] ss:$12 sps:$4 sm:$0xff]  }
  0x1d   : > { %646 = vmatpush1.msra.mxu1 %v595_v16  ;;  %v2658_v49 = vld [vmem:[%s3791_s4 + $0x150] ss:$12 sps:$4 sm:$0xff]   ;;  %v2663_v51 = vld [vmem:[%s3791_s4 + $0x138] ss:$12 sps:$4 sm:$0xff]   ;;  %v2668_v53 = vld [vmem:[%s3791_s4 + $0x120] ss:$12 sps:$4 sm:$0xff]  }
  0x1e   : > { %2449 = vmatmul.mubr.msk.f32.vlgmr.msra.gmra.mxu1 %vm3805_vm0, %v594_v17  ;;  %1031 = vmatprep.subr.bf16.mxu1 %v2631_v18  ;;  %v2665_v50 = vld [vmem:[%s3791_s4 + $0x13c] ss:$12 sps:$4 sm:$0xff]   ;;  %v2670_v52 = vld [vmem:[%s3791_s4 + $0x124] ss:$12 sps:$4 sm:$0xff]   ;;  %v2675_v54 = vld [vmem:[%s3791_s4 + $0x10c] ss:$12 sps:$4 sm:$0xff]  }
  0x1f   : > { %1032 = vmatpush1.bf16.msra.mxu1 %v2629_v19  ;;  %2530 = vmatpush3.bf16.msra.mxu0 %v2667_v31  ;;  %v2673_v55 = vld [vmem:[%s3791_s4 + $0x108] ss:$12 sps:$4 sm:$0xff]   ;;  %v2678_v57 = vld [vmem:[%s3791_s4 + $0xf0] ss:$12 sps:$4 sm:$0xff]   ;;  %v2686_v59 = vld [vmem:[%s3791_s4 + $0xe0] ss:$12 sps:$4 sm:$0xff]  }
  0x20   : > { %1033 = vmatprep.subr.bf16.mxu1 %v2634_v20  ;;  %2531 = vmatprep.subr.bf16.mxu0 %v2671_v34  ;;  %v2680_v56 = vld [vmem:[%s3791_s4 + $0xf4] ss:$12 sps:$4 sm:$0xff]   ;;  %v2685_v58 = vld [vmem:[%s3791_s4 + $0xdc] ss:$12 sps:$4 sm:$0xff]   ;;  %v2683_v60 = vld [vmem:[%s3791_s4 + $0xd8] ss:$12 sps:$4 sm:$0xff]  }
  0x21   : > { %v2687_v61 = vld [vmem:[%s3791_s4 + $0x20] ss:$12 sps:$4 sm:$0xff]   ;;  %v2690_v62 = vld [vmem:[%s3791_s4 + $0xc4] ss:$12 sps:$4 sm:$0xff]   ;;  %v2691_v63 = vld [vmem:[%s3791_s4 + $0xc8] ss:$12 sps:$4 sm:$0xff]  }
  0x22   : > { %v2688_v0 = vld [vmem:[%s3791_s4 + $0xc0] ss:$12 sps:$4 sm:$0xff]   ;;  %v2692_v1 = vld [vmem:[%s3791_s4 + $0x8] ss:$12 sps:$4 sm:$0xff]   ;;  %s2748_s30 = smov 19   ;;  %s2751_s28 = smov 91  }
  0x23   : > { %1034 = vmatpush1.bf16.msra.mxu1 %v2632_v21  ;;  %2532 = vmatpush3.bf16.msra.mxu0 %v2672_v35  ;;  %v2450_v2 = vld.sshfl [vmem:[%s571_s29] sm:$0x33 pattern:$0x76325410]  ;;  %v2757_v35 = vmov 0   ;;  %vm1158_vm12 = vcmask 1031168  }
  0x24   : > { %1035 = vmatprep.subr.bf16.mxu1 %v2637_v22  ;;  %2533 = vmatprep.subr.bf16.mxu0 %v2676_v37  ;;  %v697_v8 = vcombine.high %v2450_v2, %v2450_v2  ;;  %vm1149_vm13 = vcmask 1039360   ;;  %vm3807_vm14 = vcmask 588800  }
  0x25   : > { %2627 = vset.pattern.permute.xlu1 %v2757_v35  ;;  %2628 = vset.pattern.permute.xlu0 %v2757_v35 }
  0x27   : > { %1036 = vmatpush1.bf16.msra.mxu1 %v2635_v25  ;;  %2534 = vmatpush3.bf16.msra.mxu0 %v2677_v40 }
  0x28   : > { %1037 = vmatprep.subr.bf16.mxu1 %v2640_v26  ;;  %2535 = vmatprep.subr.bf16.mxu0 %v2681_v41 }
  0x2b   : > { %1038 = vmatpush1.bf16.msra.mxu1 %v2638_v29  ;;  %2536 = vmatpush3.bf16.msra.mxu0 %v2682_v43 }
  0x2c   : > { %1039 = vmatprep.subr.bf16.mxu1 %v2643_v32  ;;  %2537 = vmatprep.subr.bf16.mxu0 %v2686_v59 }
  0x2f   : > { %1040 = vmatpush1.bf16.msra.mxu1 %v2641_v33  ;;  %2538 = vmatpush3.bf16.msra.mxu0 %v2687_v61 }
  0x30   : > { %1041 = vmatprep.subr.bf16.mxu1 %v2646_v36  ;;  %2539 = vmatprep.subr.bf16.mxu0 %v2691_v63  ;;  %v1113_v36 = vld [vmem:[%s3795_s8] sm:$0xff] }
  0x33   : > { %1042 = vmatpush1.bf16.msra.mxu1 %v2644_v38  ;;  %2540 = vmatpush3.bf16.msra.mxu0 %v2692_v1 }
  0x34   : > { %1043 = vmatprep.subr.bf16.mxu1 %v2649_v39 }
  0x37   : > { %1044 = vmatpush1.bf16.msra.mxu1 %v2647_v42 }
  0x38   : > { %1045 = vmatprep.subr.bf16.mxu1 %v2652_v44 }
  0x3b   : > { %1046 = vmatpush1.bf16.msra.mxu1 %v2650_v45 }
  0x3c   : > { %1047 = vmatprep.subr.bf16.mxu1 %v2655_v46 }
  0x3f   : > { %1048 = vmatpush2.bf16.msra.mxu1 %v2653_v47 }
  0x40   : > { %1049 = vmatprep.subr.bf16.mxu1 %v2660_v48 }
  0x43   : > { %1050 = vmatpush2.bf16.msra.mxu1 %v2658_v49 }
  0x44   : > { %1051 = vmatprep.subr.bf16.mxu1 %v2665_v50 }
  0x47   : > { %1052 = vmatpush2.bf16.msra.mxu1 %v2663_v51 }
  0x48   : > { %1053 = vmatprep.subr.bf16.mxu1 %v2670_v52 }
  0x4b   : > { %1054 = vmatpush2.bf16.msra.mxu1 %v2668_v53 }
  0x4c   : > { %1055 = vmatprep.subr.bf16.mxu1 %v2675_v54 }
  0x4f   : > { %1056 = vmatpush2.bf16.msra.mxu1 %v2673_v55 }
  0x50   : > { %1057 = vmatprep.subr.bf16.mxu1 %v2680_v56 }
  0x53   : > { %1058 = vmatpush2.bf16.msra.mxu1 %v2678_v57 }
  0x54   : > { %1059 = vmatprep.subr.bf16.mxu1 %v2685_v58 }
  0x57   : > { %1060 = vmatpush2.bf16.msra.mxu1 %v2683_v60 }
  0x58   : > { %1061 = vmatprep.subr.bf16.mxu1 %v2690_v62 }
  0x5b   : > { %1062 = vmatpush2.bf16.msra.mxu1 %v2688_v0 }
  0x5c   : > { %2565 = vmatprep.subr.bf16.mxu1 %v2747_v4 }
  0xde   : > { %v681_v3 = vpop.f32.mrf.mxu1 }
  0xdf   : > { %v687_v5 = vpack.c.bf16 %v681_v3, %v681_v3 }
  0xe0   : > { %v683_v6 = vpop.f32.mrf.mxu1 }
  0xe1   : > { %v688_v7 = vpack.c.bf16 %v683_v6, %v683_v6  ;;  %v700_v9 = vrot.slane %v687_v5, 6 }
  0xe3   : > { %v701_v10 = vrot.slane %v688_v7, 6  ;;  %v705_v12 = vsel %vm702_vm1, %v2450_v2, %v700_v9 }
  0xe5   : > { %v709_v11 = vsel %vm702_vm1, %v697_v8, %v701_v10 }
  0xe6   : > { %1063 = vmatprep.mubr.bf16.mxu1 %v709_v11  ;;  %1104 = vmatprep.mubr.bf16.mxu0 %v709_v11 }
  0xe7   : > { %1064 = vmatmul.mubr.bf16.vlgmr.msra.gmra.mxu1 %v705_v12  ;;  %1105 = vmatmul.mubr.bf16.vlgmr.msra.gmra.mxu0 %v705_v12 }
  0xe8   : > { %2575 = vmatprep.mubr.msk.bf16.mxu1 %vm3806_vm4, %v2747_v4  ;;  %1312 = vmatprep.mubr.bf16.mxu0 %v2757_v35 }
 0x1a7   : > { %v1065_v13 = vpop.f32.mrf.mxu1  ;;  %v2541_v14 = vpop.f32.mrf.mxu0 }
 0x1a8   : > { %v1116_v15 = vpack.c.bf16 %v1065_v13, %v1065_v13 }
 0x1a9   : > { %v1067_v16 = vpop.f32.mrf.mxu1  ;;  %v2542_v17 = vpop.f32.mrf.mxu0 }
 0x1aa   : > { %v1117_v18 = vpack.c.bf16 %v1067_v16, %v1067_v16  ;;  %v2543_v19 = vadd.f32 %v2542_v17, %v2541_v14  ;;  %1122 = vrot.lane.b32.xlu1 %v1116_v15, %s2748_s30 }
 0x1ab   : > { %v1069_v20 = vpop.f32.mrf.mxu1  ;;  %v2544_v21 = vpop.f32.mrf.mxu0 }
 0x1ac   : > { %1124 = vrot.lane.b32.xlu0 %v1117_v18, %s2748_s30  ;;  %v1118_v24 = vpack.c.bf16 %v2543_v19, %v2543_v19 }
 0x1ad   : > { %v1070_v22 = vpop.f32.mrf.mxu1  ;;  %v2545_v23 = vpop.f32.mrf.mxu0 }
 0x1b0   : > { %1126 = vrot.lane.b32.xlu0 %v1118_v24, %s2748_s30 }
 0x21c   : > { %v1123_v25 = vpop.permute.xlu1 %1122 }
 0x21d   : > { %v3069_v26 = vsel %vm1128_vm2, 0, %v1123_v25 }
 0x21e   : > { %1206 = vrot.lane.b32.xlu1 %v3069_v26, %s2749_s0  ;;  %1188 = vrot.lane.b32.xlu0 %v3069_v26, %s2750_s18  ;;  %v1140_v27 = vrot.slane %v3069_v26, 4  ;;  %v1125_v28 = vpop.permute.xlu0 %1124 }
 0x21f   : > { %v3083_v30 = vsel %vm1128_vm2, %v1123_v25, %v1125_v28 }
 0x220   : > { %v1141_v33 = vrot.slane %v3083_v30, 4 }
 0x222   : > { %1197 = vrot.lane.b32.xlu1 %v1140_v27, %s2751_s28  ;;  %1170 = vrot.lane.b32.xlu0 %v3069_v26, %s2752_s19  ;;  %v1127_v29 = vpop.permute.xlu0 %1126 }
 0x223   : > { %v1130_v31 = vsel %vm1128_vm2, %v1125_v28, %v1127_v29  ;;  %v1112_v29 = vld [vmem:[%s3794_s7] sm:$0xf] }
 0x224   : > { %v3090_v32 = vsel %vm1135_vm3, %v1130_v31, 0 }
 0x225   : > { %v1142_v34 = vrot.slane %v3090_v32, 4 }
 0x226   : > { %1179 = vrot.lane.b32.xlu1 %v1140_v27, %s2753_s1  ;;  %1152 = vrot.lane.b32.xlu0 %v3069_v26, %s2754_s20 }
 0x22a   : > { %1161 = vrot.lane.b32.xlu1 %v1140_v27, %s2755_s21  ;;  %1208 = vrot.lane.b32.xlu0 %v3083_v30, %s2749_s0 }
 0x22e   : > { %1190 = vrot.lane.b32.xlu0 %v3083_v30, %s2750_s18  ;;  %1210 = vrot.lane.b32.xlu1 %v3090_v32, %s2749_s0 }
 0x232   : > { %1172 = vrot.lane.b32.xlu0 %v3083_v30, %s2752_s19  ;;  %1192 = vrot.lane.b32.xlu1 %v3090_v32, %s2750_s18 }
 0x236   : > { %1154 = vrot.lane.b32.xlu0 %v3083_v30, %s2754_s20  ;;  %1174 = vrot.lane.b32.xlu1 %v3090_v32, %s2752_s19 }
 0x23a   : > { %1199 = vrot.lane.b32.xlu0 %v1141_v33, %s2751_s28  ;;  %1156 = vrot.lane.b32.xlu1 %v3090_v32, %s2754_s20 }
 0x23e   : > { %1181 = vrot.lane.b32.xlu0 %v1141_v33, %s2753_s1  ;;  %1201 = vrot.lane.b32.xlu1 %v1142_v34, %s2751_s28 }
 0x242   : > { %1163 = vrot.lane.b32.xlu0 %v1141_v33, %s2755_s21  ;;  %1183 = vrot.lane.b32.xlu1 %v1142_v34, %s2753_s1 }
 0x246   : > { %1145 = vrot.lane.b32.xlu0 %v1141_v33, %s2758_s22  ;;  %1165 = vrot.lane.b32.xlu1 %v1142_v34, %s2755_s21 }
 0x24a   : > { %1143 = vrot.lane.b32.xlu0 %v1140_v27, %s2758_s22  ;;  %1147 = vrot.lane.b32.xlu1 %v1142_v34, %s2758_s22 }
 0x24e   : > { %1264 = vperm.xlu1 %2627, %v1113_v36  }
 0x290   : > { %v1207_v37 = vpop.permute.xlu1 %1206  ;;  %v1189_v38 = vpop.permute.xlu0 %1188 }
 0x294   : > { %v1198_v39 = vpop.permute.xlu1 %1197  ;;  %v1171_v40 = vpop.permute.xlu0 %1170 }
 0x298   : > { %v1180_v41 = vpop.permute.xlu1 %1179  ;;  %v1153_v42 = vpop.permute.xlu0 %1152 }
 0x29c   : > { %v1162_v43 = vpop.permute.xlu1 %1161  ;;  %v1209_v44 = vpop.permute.xlu0 %1208 }
 0x29d   : > { %v1213_v45 = vsel %vm1212_vm5, %v1207_v37, %v1209_v44  ;;  %v1114_v37 = vld [vmem:[%s3796_s9] sm:$0xff] }
 0x29e   : > { %v1272_v50 = vsel %vm1215_vm6, %v1213_v45, 0 }
 0x2a0   : > { %v1211_v46 = vpop.permute.xlu1 %1210  ;;  %v1191_v47 = vpop.permute.xlu0 %1190 }
 0x2a1   : > { %v1214_v48 = vsel %vm1212_vm5, %v1209_v44, %v1211_v46  ;;  %v1278_v49 = vsel %vm1215_vm6, %v1211_v46, 0  ;;  %v1195_v63 = vsel %vm1194_vm8, %v1189_v38, %v1191_v47 }
 0x2a2   : > { %2499 = vmatprep.subr.msk.bf16.mxu0 %vm1215_vm6, %v1214_v48  ;;  %2566 = vmatpush3.bf16.msra.mxu1 %v1278_v49 }
 0x2a3   : > { %1287 = vmatpush1.bf16.msra.mxu0 %v1272_v50  ;;  %2567 = vmatprep.subr.bf16.mxu1 %v2747_v4 }
 0x2a4   : > { %v1193_v51 = vpop.permute.xlu1 %1192  ;;  %v1173_v52 = vpop.permute.xlu0 %1172 }
 0x2a5   : > { %v1196_v60 = vsel %vm1194_vm8, %v1191_v47, %v1193_v51  ;;  %v1177_v9 = vsel %vm1176_vm10, %v1171_v40, %v1173_v52  ;;  %v581_v40 = vld [vmem:[%s3793_s6] sm:$0x7] }
 0x2a8   : > { %v1175_v53 = vpop.permute.xlu1 %1174  ;;  %v1155_v54 = vpop.permute.xlu0 %1154 }
 0x2a9   : > { %v1178_v6 = vsel %vm1176_vm10, %v1173_v52, %v1175_v53  ;;  %v1159_v18 = vsel %vm1158_vm12, %v1153_v42, %v1155_v54 }
 0x2ac   : > { %v1157_v55 = vpop.permute.xlu1 %1156  ;;  %v1200_v56 = vpop.permute.xlu0 %1199 }
 0x2ad   : > { %v1204_v57 = vsel %vm1203_vm7, %v1198_v39, %v1200_v56  ;;  %v1160_v15 = vsel %vm1158_vm12, %v1155_v54, %v1157_v55 }
 0x2ae   : > { %v1252_v1 = vsel %vm1215_vm6, %v1195_v63, %v1204_v57 }
 0x2b0   : > { %v1202_v58 = vpop.permute.xlu1 %1201  ;;  %v1182_v59 = vpop.permute.xlu0 %1181 }
 0x2b1   : > { %v1205_v61 = vsel %vm1203_vm7, %v1200_v56, %v1202_v58  ;;  %v1260_v62 = vsel %vm1215_vm6, %v1193_v51, %v1202_v58  ;;  %v1186_v2 = vsel %vm1185_vm9, %v1180_v41, %v1182_v59 }
 0x2b2   : > { %2568 = vmatpush3.bf16.msra.mxu1 %v1260_v62  ;;  %v1256_v0 = vsel %vm1215_vm6, %v1196_v60, %v1205_v61  ;;  %v1240_v11 = vsel %vm1215_vm6, %v1177_v9, %v1186_v2 }
 0x2b3   : > { %1288 = vmatprep.subr.bf16.mxu0 %v1256_v0  ;;  %2569 = vmatprep.subr.bf16.mxu1 %v2747_v4 }
 0x2b4   : > { %v1184_v3 = vpop.permute.xlu1 %1183  ;;  %1289 = vmatpush1.bf16.msra.mxu0 %v1252_v1  ;;  %v1164_v5 = vpop.permute.xlu0 %1163 }
 0x2b5   : > { %v1187_v7 = vsel %vm1185_vm9, %v1182_v59, %v1184_v3  ;;  %v1248_v8 = vsel %vm1215_vm6, %v1175_v53, %v1184_v3  ;;  %v1168_v12 = vsel %vm1167_vm11, %v1162_v43, %v1164_v5 }
 0x2b6   : > { %2570 = vmatpush3.bf16.msra.mxu1 %v1248_v8  ;;  %v1244_v10 = vsel %vm1215_vm6, %v1178_v6, %v1187_v7  ;;  %v1228_v20 = vsel %vm1215_vm6, %v1159_v18, %v1168_v12 }
 0x2b7   : > { %1290 = vmatprep.subr.bf16.mxu0 %v1244_v10  ;;  %2571 = vmatprep.subr.bf16.mxu1 %v2747_v4 }
 0x2b8   : > { %v1166_v13 = vpop.permute.xlu1 %1165  ;;  %1291 = vmatpush1.bf16.msra.mxu0 %v1240_v11  ;;  %v1146_v14 = vpop.permute.xlu0 %1145 }
 0x2b9   : > { %v1169_v16 = vsel %vm1167_vm11, %v1164_v5, %v1166_v13  ;;  %v1236_v17 = vsel %vm1215_vm6, %v1157_v55, %v1166_v13 }
 0x2ba   : > { %2572 = vmatpush3.bf16.msra.mxu1 %v1236_v17  ;;  %v1232_v19 = vsel %vm1215_vm6, %v1160_v15, %v1169_v16 }
 0x2bb   : > { %1292 = vmatprep.subr.bf16.mxu0 %v1232_v19  ;;  %2573 = vmatprep.subr.bf16.mxu1 %v2747_v4 }
 0x2bc   : > { %v1148_v21 = vpop.permute.xlu1 %1147  ;;  %1293 = vmatpush1.bf16.msra.mxu0 %v1228_v20  ;;  %v1144_v22 = vpop.permute.xlu0 %1143 }
 0x2bd   : > { %v1151_v23 = vsel %vm1149_vm13, %v1146_v14, %v1148_v21  ;;  %v1224_v24 = vsel %vm1215_vm6, %v3090_v32, %v1148_v21  ;;  %v1150_v25 = vsel %vm1149_vm13, %v1144_v22, %v1146_v14 }
 0x2be   : > { %2574 = vmatpush3.bf16.msra.mxu1 %v1224_v24  ;;  %v1221_v27 = vsel %vm1215_vm6, %v3083_v30, %v1151_v23  ;;  %v1217_v28 = vsel %vm1215_vm6, %v3069_v26, %v1150_v25  ;;  %v582_v30 = vlaneseq }
 0x2bf   : > { %1294 = vmatprep.subr.bf16.mxu0 %v1221_v27  ;;  %2579 = vmatprep.subr.bf16.mxu1 %v2747_v4 }
 0x2c0   : > { %1295 = vmatpush1.bf16.msra.mxu0 %v1217_v28  ;;  %v585_v26 = vand.u32 127, %v582_v30  ;;  %v3172_v34 = vshrl.u32 %v582_v30, 7 }
 0x2c1   : > { %2576 = vmatmul.mubr.msk.bf16.vlgmr.msra.gmra.mxu1 %vm3807_vm14, %v1112_v29 }
 0x2c2   : > { %2589 = vmatprep.mubr.msk.bf16.mxu1 %vm3806_vm4, %v2747_v4  ;;  %v588_v31 = vadd.s32 1, %v585_v26  ;;  %v586_v32 = vmul.u32 2, %v585_v26  ;;  %v1372_v38 = vsub.s32 2, %v3172_v34  ;;  %v1364_v39 = vsub.s32 0, %v3172_v34 }
 0x2c3   : > { %2500 = vmatmul.mubr.msk.bf16.vlgmr.msra.gmra.mxu0 %vm3807_vm14, %v1112_v29  ;;  %v1368_v42 = vsub.s32 1, %v3172_v34  ;;  %vm1381_vm4 = vcmask 556032   ;;  %vm1395_vm14 = vcmask 31744  }
 0x2c4   : > { %1654 = vmatprep.mubr.bf16.mxu0 %v2757_v35  ;;  %v589_v33 = vmul.u32 2, %v588_v31  ;;  %vm3175_vm15 = vcmp.ge.s32.totalorder %v3172_v34, %v586_v32  ;;  %v3193_v41 = vrot.slane %v581_v40, %v1372_v38  ;;  %v3198_v46 = vrot.slane %v581_v40, %v1364_v39 }
 0x2c5   : > { %v3203_v51 = vrot.slane %v581_v40, %v1368_v42  ;;  %v1115_v42 = vld [vmem:[%s3797_s10] sm:$0xff] }
 0x2c6   : > { %vm3180_vm1 = vcmp.lt.s32.totalorder %v3172_v34, %v589_v33  ;;  %v2161_v34 = vld [vmem:[%s3792_s5 + $0x138] sm:$0xff] }
 0x2c7   : > { %vm591_vm0 = vmand %vm3175_vm15, %vm3180_vm1  ;;  %vm3817_vm15 = vmmov 0  }
 0x2c8   : > { %v3218_v6 = vsel %vm591_vm0, 1.0, %v2747_v4  ;;  %vm3816_vm0 = vcmask 588800  }
 0x2c9   : > { %v1265_v44 = vpop.permute.xlu1 %1264  ;;  %vm3818_vm1 = vmmov %vm3816_vm0 }
 0x381   : > { %v1355_v43 = vpop.f32.mrf.mxu1 }
 0x382   : > { %v1356_v45 = vadd.f32 %v1355_v43, %v1265_v44 }
 0x383   : > { %v1314_v47 = vpop.f32.mrf.mxu0  ;;  %v2577_v48 = vpop.f32.mrf.mxu1 }
 0x384   : > { %v3201_v49 = vmul.f32 %v3193_v41, %v1356_v45  ;;  %v1315_v50 = vadd.f32 %v1314_v47, %v1265_v44 }
 0x385   : > { %v1316_v52 = vpop.f32.mrf.mxu0  ;;  %v1358_v53 = vpop.f32.mrf.mxu1 }
 0x386   : > { %v1377_v54 = vmul.f32 %v3198_v46, %v1315_v50  ;;  %v1317_v55 = vadd.f32 %v1316_v52, %v1265_v44  ;;  %v1388_v58 = vmul.f32 %v3201_v49, %v3201_v49  ;;  %v1382_v61 = vsel %vm1381_vm4, %v3201_v49, 0.0 }
 0x387   : > { %v1318_v56 = vpop.f32.mrf.mxu0  ;;  %v2578_v57 = vpop.f32.mrf.mxu1 }
 0x388   : > { %v1378_v59 = vmul.f32 %v3203_v51, %v1317_v55  ;;  %v1386_v63 = vmul.f32 %v1377_v54, %v1377_v54  ;;  %v1390_v1 = vsel %vm1381_vm4, %v1388_v58, 0.0 }
 0x389   : > { %v1319_v60 = vpop.f32.mrf.mxu0 }
 0x38a   : > { %v1380_v62 = vadd.f32 %v1378_v59, %v1377_v54  ;;  %v1387_v0 = vmul.f32 %v1378_v59, %v1378_v59 }
 0x38c   : > { %v1383_v2 = vadd.f32 %v1382_v61, %v1380_v62  ;;  %v1389_v3 = vadd.f32 %v1387_v0, %v1386_v63 }
 0x38e   : > { %1384 = vadd.xlane.f32.xlu0 %v1383_v2  ;;  %v1391_v5 = vadd.f32 %v1390_v1, %v1389_v3 }
 0x390   : > { %1392 = vadd.xlane.f32.xlu1 %v1391_v5 }
 0x417   : > { %v1385_v7 = vpop.xlane.xlu0 %1384 }
 0x418   : > { %v1394_v8 = vmul.f32 %v3218_v6, %v1385_v7 }
 0x419   : > { %v1393_v9 = vpop.xlane.xlu1 %1392 }
 0x41a   : > { %v1396_v10 = vsel %vm1395_vm14, %v1394_v8, 0.0  ;;  %v1403_v11 = vmul.f32 %v3218_v6, %v1393_v9 }
 0x41b   : > { %v1397_v12 = vrot.slane %v1396_v10, 4 }
 0x41c   : > { %v1404_v13 = vsel %vm1395_vm14, %v1403_v11, 0.0 }
 0x41d   : > { %v1398_v14 = vadd.f32 %v1397_v12, %v1396_v10  ;;  %v1405_v15 = vrot.slane %v1404_v13, 4 }
 0x41f   : > { %v1399_v16 = vrot.slane %v1398_v14, 2  ;;  %v1406_v17 = vadd.f32 %v1405_v15, %v1404_v13 }
 0x421   : > { %v1400_v18 = vadd.f32 %v1399_v16, %v1398_v14  ;;  %v1407_v19 = vrot.slane %v1406_v17, 2 }
 0x423   : > { %v1401_v20 = vrot.slane %v1400_v18, 1  ;;  %v1408_v21 = vadd.f32 %v1407_v19, %v1406_v17 }
 0x425   : > { %v1402_v22 = vadd.f32 %v1401_v20, %v1400_v18  ;;  %v1409_v23 = vrot.slane %v1408_v21, 1 }
 0x427   : > { %v1411_v24 = vmul.f32 0.001953125, %v1402_v22  ;;  %v1410_v25 = vadd.f32 %v1409_v23, %v1408_v21 }
 0x429   : > { %v1413_v27 = vmul.f32 %v1411_v24, %v1411_v24  ;;  %v1412_v28 = vmul.f32 0.001953125, %v1410_v25  ;;  %v1417_v33 = vmul.f32 %v3218_v6, %v1411_v24  ;;  %v1469_v25 = vld [vmem:[%s3799_s12] sm:$0xff] }
 0x42b   : > { %v1414_v29 = vsub.f32 %v1412_v28, %v1413_v27  ;;  %v1418_v36 = vsel %vm1395_vm14, %v1417_v33, 0.0 }
 0x42d   : > { %v1415_v30 = vadd.f32 1e-05, %v1414_v29 }
 0x42f   : > { %2693 = vrsqrt.f32 %v1415_v30 }
 0x43c   : > { %v2694_v26 = vpop.eup %2693 }
 0x43d   : > { %v1421_v31 = vmul.f32 %v2694_v26, %v3218_v6 }
 0x43f   : > { %v1422_v32 = vsel %vm1395_vm14, %v1421_v31, 0.0 }
 0x440   : > { %1423 = vadd.xlane.f32.xlu0 %v1422_v32 }
 0x444   : > { %1419 = vadd.xlane.f32.xlu0 %v1418_v36 }
 0x4c9   : > { %v1424_v38 = vpop.xlane.xlu0 %1423 }
 0x4ca   : > { %v1425_v40 = vmul.f32 %v1424_v38, %v1114_v37 }
 0x4cc   : > { %1430 = vperm.xlu1 %2627, %v1425_v40  }
 0x4cd   : > { %v1420_v43 = vpop.xlane.xlu0 %1419 }
 0x4ce   : > { %v1426_v44 = vmul.f32 %v1425_v40, %v1420_v43 }
 0x4d0   : > { %v1427_v45 = vsub.f32 %v1115_v42, %v1426_v44 }
 0x4d2   : > { %1438 = vperm.xlu0 %2628, %v1427_v45  }
 0x547   : > { %v1431_v47 = vpop.permute.xlu1 %1430 }
 0x548   : > { %v1433_v48 = vmul.f32 %v1431_v47, %v1377_v54  ;;  %v1434_v50 = vmul.f32 %v1431_v47, %v1378_v59  ;;  %v1435_v52 = vmul.f32 %v1431_v47, %v3201_v49 }
 0x54d   : > { %v1439_v53 = vpop.permute.xlu0 %1438 }
 0x54e   : > { %v1441_v55 = vadd.f32 %v1439_v53, %v1433_v48  ;;  %v1442_v56 = vadd.f32 %v1439_v53, %v1434_v50  ;;  %v1443_v57 = vadd.f32 %v1439_v53, %v1435_v52 }
 0x550   : > { %v2502_v58 = vmul.f32 -1.442695, %v1441_v55  ;;  %v2503_v60 = vmul.f32 -1.442695, %v1442_v56  ;;  %v2504_v61 = vmul.f32 -1.442695, %v1443_v57 }
 0x552   : > { %2695 = vpow2.f32 %v2502_v58 }
 0x553   : > { %2697 = vpow2.f32 %v2503_v60 }
 0x554   : > { %2699 = vpow2.f32 %v2504_v61 }
 0x55f   : > { %v2696_v62 = vpop.eup %2695 }
 0x560   : > { %v2698_v63 = vpop.eup %2697  ;;  %v1453_v1 = vadd.f32 1.0, %v2696_v62 }
 0x561   : > { %v2700_v0 = vpop.eup %2699  ;;  %v1454_v2 = vadd.f32 1.0, %v2698_v63 }
 0x562   : > { %v1455_v3 = vadd.f32 1.0, %v2700_v0 }
 0x563   : > { %2701 = vrcp.f32 %v1454_v2 }
 0x564   : > { %2703 = vrcp.f32 %v1455_v3 }
 0x565   : > { %2705 = vrcp.f32 %v1453_v1 }
 0x570   : > { %v2702_v49 = vpop.eup %2701 }
 0x571   : > { %v2704_v54 = vpop.eup %2703  ;;  %v1463_v59 = vmul.f32 %v2702_v49, %v1442_v56 }
 0x572   : > { %v2706_v5 = vpop.eup %2705  ;;  %v1464_v7 = vmul.f32 %v2704_v54, %v1443_v57 }
 0x573   : > { %v1466_v8 = vmul.f32 %v1463_v59, %v3203_v51  ;;  %v1462_v9 = vmul.f32 %v2706_v5, %v1441_v55 }
 0x574   : > { %v1467_v11 = vmul.f32 %v1464_v7, %v3193_v41 }
 0x575   : > { %v1473_v10 = vpack.c.bf16 %v1466_v8, %v1466_v8  ;;  %v1465_v13 = vmul.f32 %v1462_v9, %v3198_v46 }
 0x576   : > { %v1474_v12 = vpack.c.bf16 %v1467_v11, %v1467_v11 }
 0x577   : > { %1480 = vrot.lane.b32.xlu1 %v1473_v10, %s2748_s30  ;;  %v1472_v14 = vpack.c.bf16 %v1465_v13, %v1465_v13 }
 0x57b   : > { %1482 = vrot.lane.b32.xlu1 %v1474_v12, %s2748_s30 }
 0x57f   : > { %1478 = vrot.lane.b32.xlu1 %v1472_v14, %s2748_s30 }
 0x5e9   : > { %v1481_v15 = vpop.permute.xlu1 %1480 }
 0x5ed   : > { %v1483_v16 = vpop.permute.xlu1 %1482 }
 0x5ee   : > { %v1485_v20 = vsel %vm1128_vm2, %v1481_v15, %v1483_v16 }
 0x5ef   : > { %v3261_v21 = vsel %vm1135_vm3, %v1485_v20, 0 }
 0x5f0   : > { %v1494_v24 = vrot.slane %v3261_v21, 4 }
 0x5f1   : > { %v1479_v17 = vpop.permute.xlu1 %1478 }
 0x5f2   : > { %v3242_v18 = vsel %vm1128_vm2, 0, %v1479_v17  ;;  %v3249_v19 = vsel %vm1128_vm2, %v1479_v17, %v1481_v15 }
 0x5f3   : > { %1535 = vrot.lane.b32.xlu0 %v3242_v18, %s2750_s18  ;;  %1551 = vrot.lane.b32.xlu1 %v3242_v18, %s2749_s0  ;;  %v1493_v22 = vrot.slane %v3249_v19, 4  ;;  %v1492_v23 = vrot.slane %v3242_v18, 4 }
 0x5f7   : > { %1521 = vrot.lane.b32.xlu0 %v3249_v19, %s2752_s19  ;;  %1553 = vrot.lane.b32.xlu1 %v3249_v19, %s2749_s0 }
 0x5fb   : > { %1519 = vrot.lane.b32.xlu0 %v3242_v18, %s2752_s19  ;;  %1537 = vrot.lane.b32.xlu1 %v3249_v19, %s2750_s18 }
 0x5ff   : > { %1505 = vrot.lane.b32.xlu0 %v3249_v19, %s2754_s20  ;;  %1555 = vrot.lane.b32.xlu1 %v3261_v21, %s2749_s0 }
 0x603   : > { %1503 = vrot.lane.b32.xlu0 %v3242_v18, %s2754_s20  ;;  %1539 = vrot.lane.b32.xlu1 %v3261_v21, %s2750_s18 }
 0x607   : > { %1523 = vrot.lane.b32.xlu1 %v3261_v21, %s2752_s19  ;;  %1545 = vrot.lane.b32.xlu0 %v1493_v22, %s2751_s28 }
 0x60b   : > { %1507 = vrot.lane.b32.xlu1 %v3261_v21, %s2754_s20  ;;  %1529 = vrot.lane.b32.xlu0 %v1493_v22, %s2753_s1 }
 0x60f   : > { %1543 = vrot.lane.b32.xlu1 %v1492_v23, %s2751_s28  ;;  %1513 = vrot.lane.b32.xlu0 %v1493_v22, %s2755_s21 }
 0x613   : > { %1527 = vrot.lane.b32.xlu1 %v1492_v23, %s2753_s1  ;;  %1497 = vrot.lane.b32.xlu0 %v1493_v22, %s2758_s22 }
 0x617   : > { %1511 = vrot.lane.b32.xlu1 %v1492_v23, %s2755_s21  ;;  %1495 = vrot.lane.b32.xlu0 %v1492_v23, %s2758_s22 }
 0x61b   : > { %1547 = vrot.lane.b32.xlu1 %v1494_v24, %s2751_s28 }
 0x61f   : > { %1531 = vrot.lane.b32.xlu1 %v1494_v24, %s2753_s1 }
 0x623   : > { %1515 = vrot.lane.b32.xlu1 %v1494_v24, %s2755_s21 }
 0x627   : > { %1499 = vrot.lane.b32.xlu1 %v1494_v24, %s2758_s22 }
 0x62b   : > { %1607 = vperm.xlu1 %2627, %v1469_v25  }
 0x665   : > { %v1536_v27 = vpop.permute.xlu0 %1535  ;;  %v1552_v28 = vpop.permute.xlu1 %1551 }
 0x669   : > { %v1522_v29 = vpop.permute.xlu0 %1521  ;;  %v1554_v30 = vpop.permute.xlu1 %1553 }
 0x66a   : > { %v1557_v32 = vsel %vm1212_vm5, %v1552_v28, %v1554_v30 }
 0x66b   : > { %v1614_v40 = vsel %vm1215_vm6, %v1557_v32, 0 }
 0x66d   : > { %v1520_v26 = vpop.permute.xlu0 %1519  ;;  %v1538_v31 = vpop.permute.xlu1 %1537 }
 0x66e   : > { %v1541_v62 = vsel %vm1194_vm8, %v1536_v27, %v1538_v31  ;;  %v1525_v5 = vsel %vm1176_vm10, %v1520_v26, %v1522_v29  ;;  %v3332_v27 = vld [vmem:[%s3798_s11] sm:$0xf] }
 0x671   : > { %v1556_v33 = vpop.permute.xlu1 %1555  ;;  %v1506_v36 = vpop.permute.xlu0 %1505 }
 0x672   : > { %v1558_v37 = vsel %vm1212_vm5, %v1554_v30, %v1556_v33  ;;  %v1620_v38 = vsel %vm1215_vm6, %v1556_v33, 0 }
 0x673   : > { %2505 = vmatprep.subr.msk.bf16.mxu0 %vm1215_vm6, %v1558_v37  ;;  %2580 = vmatpush3.bf16.msra.mxu1 %v1620_v38 }
 0x674   : > { %1629 = vmatpush1.bf16.msra.mxu0 %v1614_v40  ;;  %2581 = vmatprep.subr.bf16.mxu1 %v2747_v4 }
 0x675   : > { %v1540_v42 = vpop.permute.xlu1 %1539  ;;  %v1504_v43 = vpop.permute.xlu0 %1503 }
 0x676   : > { %v1542_v58 = vsel %vm1194_vm8, %v1538_v31, %v1540_v42  ;;  %v1509_v15 = vsel %vm1158_vm12, %v1504_v43, %v1506_v36 }
 0x679   : > { %v1524_v44 = vpop.permute.xlu1 %1523  ;;  %v1546_v47 = vpop.permute.xlu0 %1545 }
 0x67a   : > { %v1526_v49 = vsel %vm1176_vm10, %v1522_v29, %v1524_v44 }
 0x67d   : > { %v1508_v45 = vpop.permute.xlu1 %1507  ;;  %v1530_v50 = vpop.permute.xlu0 %1529 }
 0x67e   : > { %v1510_v11 = vsel %vm1158_vm12, %v1506_v36, %v1508_v45 }
 0x681   : > { %v1544_v48 = vpop.permute.xlu1 %1543  ;;  %v1514_v55 = vpop.permute.xlu0 %1513 }
 0x682   : > { %v1549_v56 = vsel %vm1203_vm7, %v1544_v48, %v1546_v47 }
 0x683   : > { %v1595_v1 = vsel %vm1215_vm6, %v1541_v62, %v1549_v56 }
 0x685   : > { %v1528_v52 = vpop.permute.xlu1 %1527  ;;  %v1498_v0 = vpop.permute.xlu0 %1497 }
 0x686   : > { %v1533_v2 = vsel %vm1185_vm9, %v1528_v52, %v1530_v50 }
 0x687   : > { %v1583_v8 = vsel %vm1215_vm6, %v1525_v5, %v1533_v2 }
 0x689   : > { %v1512_v53 = vpop.permute.xlu1 %1511  ;;  %v1496_v12 = vpop.permute.xlu0 %1495 }
 0x68a   : > { %v1517_v9 = vsel %vm1167_vm11, %v1512_v53, %v1514_v55  ;;  %v1501_v20 = vsel %vm1149_vm13, %v1496_v12, %v1498_v0 }
 0x68b   : > { %v1571_v17 = vsel %vm1215_vm6, %v1509_v15, %v1517_v9  ;;  %v1560_v28 = vsel %vm1215_vm6, %v3242_v18, %v1501_v20 }
 0x68d   : > { %v1548_v57 = vpop.permute.xlu1 %1547 }
 0x68e   : > { %v1550_v60 = vsel %vm1203_vm7, %v1546_v47, %v1548_v57  ;;  %v1603_v61 = vsel %vm1215_vm6, %v1540_v42, %v1548_v57 }
 0x68f   : > { %2582 = vmatpush3.bf16.msra.mxu1 %v1603_v61  ;;  %v1599_v63 = vsel %vm1215_vm6, %v1542_v58, %v1550_v60 }
 0x690   : > { %1630 = vmatprep.subr.bf16.mxu0 %v1599_v63  ;;  %2583 = vmatprep.subr.bf16.mxu1 %v2747_v4 }
 0x691   : > { %v1532_v3 = vpop.permute.xlu1 %1531  ;;  %1631 = vmatpush1.bf16.msra.mxu0 %v1595_v1 }
 0x692   : > { %v1534_v54 = vsel %vm1185_vm9, %v1530_v50, %v1532_v3  ;;  %v1591_v59 = vsel %vm1215_vm6, %v1524_v44, %v1532_v3 }
 0x693   : > { %2584 = vmatpush3.bf16.msra.mxu1 %v1591_v59  ;;  %v1587_v7 = vsel %vm1215_vm6, %v1526_v49, %v1534_v54 }
 0x694   : > { %1632 = vmatprep.subr.bf16.mxu0 %v1587_v7  ;;  %2585 = vmatprep.subr.bf16.mxu1 %v2747_v4 }
 0x695   : > { %v1516_v10 = vpop.permute.xlu1 %1515  ;;  %1633 = vmatpush1.bf16.msra.mxu0 %v1583_v8 }
 0x696   : > { %v1518_v13 = vsel %vm1167_vm11, %v1514_v55, %v1516_v10  ;;  %v1579_v14 = vsel %vm1215_vm6, %v1508_v45, %v1516_v10 }
 0x697   : > { %2586 = vmatpush3.bf16.msra.mxu1 %v1579_v14  ;;  %v1575_v16 = vsel %vm1215_vm6, %v1510_v11, %v1518_v13 }
 0x698   : > { %1634 = vmatprep.subr.bf16.mxu0 %v1575_v16  ;;  %2587 = vmatprep.subr.bf16.mxu1 %v2747_v4 }
 0x699   : > { %v1500_v22 = vpop.permute.xlu1 %1499  ;;  %1635 = vmatpush1.bf16.msra.mxu0 %v1571_v17 }
 0x69a   : > { %v1502_v23 = vsel %vm1149_vm13, %v1498_v0, %v1500_v22  ;;  %v1567_v24 = vsel %vm1215_vm6, %v3261_v21, %v1500_v22 }
 0x69b   : > { %2588 = vmatpush3.bf16.msra.mxu1 %v1567_v24  ;;  %v1564_v25 = vsel %vm1215_vm6, %v3249_v19, %v1502_v23  ;;  %v3370_v23 = vld [vmem:[%s3800_s13] sm:$0xff] }
 0x69c   : > { %1636 = vmatprep.subr.bf16.mxu0 %v1564_v25  ;;  %2593 = vmatprep.subr.bf16.mxu1 %v2747_v4 }
 0x69d   : > { %1637 = vmatpush1.bf16.msra.mxu0 %v1560_v28  ;;  %v3376_v28 = vld [vmem:[%s3801_s14] sm:$0xff] }
 0x69e   : > { %2590 = vmatmul.mubr.msk.bf16.vlgmr.msra.gmra.mxu1 %vm3816_vm0, %v3332_v27 }
 0x69f   : > { %2603 = vmatprep.mubr.msk.bf16.mxu1 %vm3817_vm15, %v2747_v4 }
 0x6a0   : > { %2506 = vmatmul.mubr.msk.bf16.vlgmr.msra.gmra.mxu0 %vm3818_vm1, %v3332_v27 }
 0x6a1   : > { %1966 = vmatprep.mubr.bf16.mxu0 %v2757_v35 }
 0x6a6   : > { %v3344_v19 = vpop.permute.xlu1 %1607 }
 0x75e   : > { %v1697_v21 = vpop.f32.mrf.mxu1 }
 0x75f   : > { %v1698_v29 = vadd.f32 %v1697_v21, %v3344_v19 }
 0x760   : > { %v1656_v18 = vpop.f32.mrf.mxu0  ;;  %v2591_v30 = vpop.f32.mrf.mxu1 }
 0x761   : > { %v1657_v26 = vadd.f32 %v1656_v18, %v3344_v19  ;;  %v3349_v31 = vmul.f32 %v1698_v29, %v3193_v41 }
 0x762   : > { %v1658_v32 = vpop.f32.mrf.mxu0  ;;  %v1700_v33 = vpop.f32.mrf.mxu1 }
 0x763   : > { %v1703_v36 = vmul.f32 %v1657_v26, %v3198_v46  ;;  %v1659_v37 = vadd.f32 %v1658_v32, %v3344_v19  ;;  %v1713_v43 = vmul.f32 %v3349_v31, %v3349_v31  ;;  %v1707_v48 = vsel %vm1381_vm4, %v3349_v31, 0.0 }
 0x764   : > { %v1660_v38 = vpop.f32.mrf.mxu0  ;;  %v2592_v35 = vpop.f32.mrf.mxu1 }
 0x765   : > { %v1704_v40 = vmul.f32 %v1659_v37, %v3203_v51  ;;  %v1711_v45 = vmul.f32 %v1703_v36, %v1703_v36  ;;  %v1715_v53 = vsel %vm1381_vm4, %v1713_v43, 0.0 }
 0x766   : > { %v1661_v42 = vpop.f32.mrf.mxu0 }
 0x767   : > { %v1706_v44 = vadd.f32 %v1704_v40, %v1703_v36  ;;  %v1712_v47 = vmul.f32 %v1704_v40, %v1704_v40 }
 0x769   : > { %v1708_v50 = vadd.f32 %v1707_v48, %v1706_v44  ;;  %v1714_v52 = vadd.f32 %v1712_v47, %v1711_v45 }
 0x76b   : > { %1709 = vadd.xlane.f32.xlu0 %v1708_v50  ;;  %v1716_v55 = vadd.f32 %v1715_v53, %v1714_v52 }
 0x76d   : > { %1717 = vadd.xlane.f32.xlu1 %v1716_v55 }
 0x7f4   : > { %v1710_v56 = vpop.xlane.xlu0 %1709 }
 0x7f5   : > { %v1719_v57 = vmul.f32 %v3218_v6, %v1710_v56 }
 0x7f6   : > { %v1718_v58 = vpop.xlane.xlu1 %1717 }
 0x7f7   : > { %v1720_v60 = vsel %vm1395_vm14, %v1719_v57, 0.0  ;;  %v1727_v61 = vmul.f32 %v3218_v6, %v1718_v58 }
 0x7f8   : > { %v1721_v62 = vrot.slane %v1720_v60, 4 }
 0x7f9   : > { %v1728_v63 = vsel %vm1395_vm14, %v1727_v61, 0.0 }
 0x7fa   : > { %v1722_v0 = vadd.f32 %v1721_v62, %v1720_v60  ;;  %v1729_v1 = vrot.slane %v1728_v63, 4 }
 0x7fc   : > { %v1723_v2 = vrot.slane %v1722_v0, 2  ;;  %v1730_v3 = vadd.f32 %v1729_v1, %v1728_v63 }
 0x7fe   : > { %v1724_v49 = vadd.f32 %v1723_v2, %v1722_v0  ;;  %v1731_v54 = vrot.slane %v1730_v3, 2 }
 0x800   : > { %v1725_v59 = vrot.slane %v1724_v49, 1  ;;  %v1732_v5 = vadd.f32 %v1731_v54, %v1730_v3 }
 0x802   : > { %v1726_v7 = vadd.f32 %v1725_v59, %v1724_v49  ;;  %v1733_v8 = vrot.slane %v1732_v5, 1 }
 0x804   : > { %v1735_v9 = vmul.f32 0.001953125, %v1726_v7  ;;  %v1734_v10 = vadd.f32 %v1733_v8, %v1732_v5 }
 0x806   : > { %v1737_v11 = vmul.f32 %v1735_v9, %v1735_v9  ;;  %v1736_v12 = vmul.f32 0.001953125, %v1734_v10  ;;  %v1741_v20 = vmul.f32 %v3218_v6, %v1735_v9 }
 0x808   : > { %v1738_v13 = vsub.f32 %v1736_v12, %v1737_v11  ;;  %v1742_v22 = vsel %vm1395_vm14, %v1741_v20, 0.0 }
 0x80a   : > { %v1739_v14 = vadd.f32 1e-05, %v1738_v13 }
 0x80c   : > { %2707 = vrsqrt.f32 %v1739_v14 }
 0x819   : > { %v2708_v15 = vpop.eup %2707 }
 0x81a   : > { %v1745_v16 = vmul.f32 %v2708_v15, %v3218_v6 }
 0x81c   : > { %v1746_v17 = vsel %vm1395_vm14, %v1745_v16, 0.0 }
 0x81d   : > { %1747 = vadd.xlane.f32.xlu0 %v1746_v17 }
 0x821   : > { %1743 = vadd.xlane.f32.xlu0 %v1742_v22 }
 0x8a6   : > { %v1748_v24 = vpop.xlane.xlu0 %1747 }
 0x8a7   : > { %v1749_v25 = vmul.f32 %v1748_v24, %v3370_v23 }
 0x8a9   : > { %1754 = vperm.xlu1 %2627, %v1749_v25  }
 0x8aa   : > { %v1744_v21 = vpop.xlane.xlu0 %1743 }
 0x8ab   : > { %v1750_v29 = vmul.f32 %v1749_v25, %v1744_v21 }
 0x8ad   : > { %v1751_v18 = vsub.f32 %v3376_v28, %v1750_v29 }
 0x8af   : > { %1762 = vperm.xlu0 %2628, %v1751_v18  }
 0x924   : > { %v1755_v30 = vpop.permute.xlu1 %1754 }
 0x925   : > { %v1757_v26 = vmul.f32 %v1755_v30, %v1703_v36  ;;  %v1758_v32 = vmul.f32 %v1755_v30, %v1704_v40  ;;  %v1759_v33 = vmul.f32 %v1755_v30, %v3349_v31 }
 0x92a   : > { %v1763_v37 = vpop.permute.xlu0 %1762 }
 0x92b   : > { %v1765_v38 = vadd.f32 %v1763_v37, %v1757_v26  ;;  %v1766_v35 = vadd.f32 %v1763_v37, %v1758_v32  ;;  %v1767_v42 = vadd.f32 %v1763_v37, %v1759_v33 }
 0x92d   : > { %v2508_v43 = vmul.f32 -1.442695, %v1765_v38  ;;  %v2509_v44 = vmul.f32 -1.442695, %v1766_v35  ;;  %v2510_v45 = vmul.f32 -1.442695, %v1767_v42 }
 0x92f   : > { %2709 = vpow2.f32 %v2508_v43 }
 0x930   : > { %2711 = vpow2.f32 %v2509_v44 }
 0x931   : > { %2713 = vpow2.f32 %v2510_v45 }
 0x93c   : > { %v2710_v47 = vpop.eup %2709 }
 0x93d   : > { %v2712_v48 = vpop.eup %2711  ;;  %v1777_v50 = vadd.f32 1.0, %v2710_v47 }
 0x93e   : > { %v2714_v52 = vpop.eup %2713  ;;  %v1778_v53 = vadd.f32 1.0, %v2712_v48 }
 0x93f   : > { %v1779_v55 = vadd.f32 1.0, %v2714_v52  ;;  %2715 = vrcp.f32 %v1777_v50 }
 0x940   : > { %2717 = vrcp.f32 %v1778_v53 }
 0x941   : > { %2719 = vrcp.f32 %v1779_v55 }
 0x94c   : > { %v2716_v31 = vpop.eup %2715 }
 0x94d   : > { %v2718_v36 = vpop.eup %2717  ;;  %v1786_v40 = vmul.f32 %v2716_v31, %v1765_v38 }
 0x94e   : > { %v2720_v56 = vpop.eup %2719  ;;  %v1787_v57 = vmul.f32 %v2718_v36, %v1766_v35 }
 0x94f   : > { %v1788_v58 = vmul.f32 %v2720_v56, %v1767_v42  ;;  %v1789_v60 = vmul.f32 %v1786_v40, %v3198_v46 }
 0x950   : > { %v1790_v61 = vmul.f32 %v1787_v57, %v3203_v51 }
 0x951   : > { %v1792_v62 = vpack.c.bf16 %v1789_v60, %v1789_v60  ;;  %v1791_v0 = vmul.f32 %v1788_v58, %v3193_v41 }
 0x952   : > { %v1793_v63 = vpack.c.bf16 %v1790_v61, %v1790_v61 }
 0x953   : > { %1798 = vrot.lane.b32.xlu0 %v1792_v62, %s2748_s30  ;;  %v1794_v1 = vpack.c.bf16 %v1791_v0, %v1791_v0 }
 0x954   : > { %1800 = vrot.lane.b32.xlu1 %v1793_v63, %s2748_s30 }
 0x958   : > { %1802 = vrot.lane.b32.xlu1 %v1794_v1, %s2748_s30 }
 0x9c5   : > { %v1799_v2 = vpop.permute.xlu0 %1798 }
 0x9c6   : > { %v1801_v3 = vpop.permute.xlu1 %1800  ;;  %v3387_v49 = vsel %vm1128_vm2, 0, %v1799_v2 }
 0x9c7   : > { %v3390_v54 = vsel %vm1128_vm2, %v1799_v2, %v1801_v3  ;;  %1871 = vrot.lane.b32.xlu1 %v3387_v49, %s2749_s0  ;;  %v1812_v8 = vrot.slane %v3387_v49, 4 }
 0x9c8   : > { %1873 = vrot.lane.b32.xlu0 %v3390_v54, %s2749_s0  ;;  %v1813_v9 = vrot.slane %v3390_v54, 4 }
 0x9ca   : > { %v1803_v59 = vpop.permute.xlu1 %1802 }
 0x9cb   : > { %v1805_v5 = vsel %vm1128_vm2, %v1801_v3, %v1803_v59  ;;  %vm3819_vm2 = vmmov %vm3816_vm0 }
 0x9cc   : > { %v3398_v7 = vsel %vm1135_vm3, %v1805_v5, 0  ;;  %1857 = vrot.lane.b32.xlu0 %v3390_v54, %s2750_s18  ;;  %vm3820_vm3 = vmmov %vm3816_vm0 }
 0x9cd   : > { %1875 = vrot.lane.b32.xlu1 %v3398_v7, %s2749_s0  ;;  %v1814_v10 = vrot.slane %v3398_v7, 4 }
 0x9d0   : > { %1855 = vrot.lane.b32.xlu0 %v3387_v49, %s2750_s18 }
 0x9d1   : > { %1859 = vrot.lane.b32.xlu1 %v3398_v7, %s2750_s18  ;;  %s2524_s18 = sshll.u32 %s3823_s25, 4 }
 0x9d4   : > { %1841 = vrot.lane.b32.xlu0 %v3390_v54, %s2752_s19 }
 0x9d5   : > { %1843 = vrot.lane.b32.xlu1 %v3398_v7, %s2752_s19 }
 0x9d8   : > { %1839 = vrot.lane.b32.xlu0 %v3387_v49, %s2752_s19 }
 0x9d9   : > { %1827 = vrot.lane.b32.xlu1 %v3398_v7, %s2754_s20 }
 0x9dc   : > { %1825 = vrot.lane.b32.xlu0 %v3390_v54, %s2754_s20 }
 0x9dd   : > { %1863 = vrot.lane.b32.xlu1 %v1812_v8, %s2751_s28 }
 0x9e0   : > { %1823 = vrot.lane.b32.xlu0 %v3387_v49, %s2754_s20 }
 0x9e1   : > { %1847 = vrot.lane.b32.xlu1 %v1812_v8, %s2753_s1 }
 0x9e4   : > { %1865 = vrot.lane.b32.xlu0 %v1813_v9, %s2751_s28 }
 0x9e5   : > { %1831 = vrot.lane.b32.xlu1 %v1812_v8, %s2755_s21 }
 0x9e8   : > { %1849 = vrot.lane.b32.xlu0 %v1813_v9, %s2753_s1 }
 0x9e9   : > { %1867 = vrot.lane.b32.xlu1 %v1814_v10, %s2751_s28 }
 0x9ec   : > { %1833 = vrot.lane.b32.xlu0 %v1813_v9, %s2755_s21 }
 0x9ed   : > { %1851 = vrot.lane.b32.xlu1 %v1814_v10, %s2753_s1  ;;  %s579_s1 = scalar_lea.vmem %s3804_s17, %s2524_s18 }
 0x9f0   : > { %1817 = vrot.lane.b32.xlu0 %v1813_v9, %s2758_s22 }
 0x9f1   : > { %1835 = vrot.lane.b32.xlu1 %v1814_v10, %s2755_s21 }
 0x9f4   : > { %1815 = vrot.lane.b32.xlu0 %v1812_v8, %s2758_s22 }
 0x9f5   : > { %1819 = vrot.lane.b32.xlu1 %v1814_v10, %s2758_s22 }
 0xa39   : > { %v1872_v11 = vpop.permute.xlu1 %1871 }
 0xa3a   : > { %v1874_v12 = vpop.permute.xlu0 %1873 }
 0xa3b   : > { %v1877_v13 = vsel %vm1212_vm5, %v1872_v11, %v1874_v12 }
 0xa3c   : > { %v1926_v20 = vsel %vm1215_vm6, %v1877_v13, 0 }
 0xa3e   : > { %v1858_v14 = vpop.permute.xlu0 %1857 }
 0xa3f   : > { %v1876_v15 = vpop.permute.xlu1 %1875 }
 0xa40   : > { %v1878_v16 = vsel %vm1212_vm5, %v1874_v12, %v1876_v15  ;;  %v1932_v17 = vsel %vm1215_vm6, %v1876_v15, 0  ;;  %vm3821_vm5 = vcmask 523264  }
 0xa41   : > { %2511 = vmatprep.subr.msk.bf16.mxu0 %vm1215_vm6, %v1878_v16  ;;  %2594 = vmatpush3.bf16.msra.mxu1 %v1932_v17 }
 0xa42   : > { %1941 = vmatpush1.bf16.msra.mxu0 %v1926_v20  ;;  %v1856_v22 = vpop.permute.xlu0 %1855  ;;  %2595 = vmatprep.subr.bf16.mxu1 %v2747_v4 }
 0xa43   : > { %v1860_v24 = vpop.permute.xlu1 %1859  ;;  %v1861_v48 = vsel %vm1194_vm8, %v1856_v22, %v1858_v14 }
 0xa44   : > { %v1862_v44 = vsel %vm1194_vm8, %v1858_v14, %v1860_v24 }
 0xa46   : > { %v1842_v25 = vpop.permute.xlu0 %1841 }
 0xa47   : > { %v1844_v21 = vpop.permute.xlu1 %1843 }
 0xa48   : > { %v1846_v36 = vsel %vm1176_vm10, %v1842_v25, %v1844_v21 }
 0xa4a   : > { %v1840_v29 = vpop.permute.xlu0 %1839 }
 0xa4b   : > { %v1828_v18 = vpop.permute.xlu1 %1827  ;;  %v1845_v57 = vsel %vm1176_vm10, %v1840_v29, %v1842_v25 }
 0xa4e   : > { %v1826_v30 = vpop.permute.xlu0 %1825 }
 0xa4f   : > { %v1864_v26 = vpop.permute.xlu1 %1863  ;;  %v1830_v0 = vsel %vm1158_vm12, %v1826_v30, %v1828_v18 }
 0xa52   : > { %v1824_v32 = vpop.permute.xlu0 %1823 }
 0xa53   : > { %v1848_v33 = vpop.permute.xlu1 %1847  ;;  %v1829_v3 = vsel %vm1158_vm12, %v1824_v32, %v1826_v30 }
 0xa56   : > { %v1866_v37 = vpop.permute.xlu0 %1865 }
 0xa57   : > { %v1832_v38 = vpop.permute.xlu1 %1831  ;;  %v1869_v42 = vsel %vm1203_vm7, %v1864_v26, %v1866_v37 }
 0xa58   : > { %v1915_v53 = vsel %vm1215_vm6, %v1861_v48, %v1869_v42 }
 0xa5a   : > { %v1850_v35 = vpop.permute.xlu0 %1849 }
 0xa5b   : > { %v1868_v43 = vpop.permute.xlu1 %1867  ;;  %v1853_v55 = vsel %vm1185_vm9, %v1848_v33, %v1850_v35 }
 0xa5c   : > { %v1870_v45 = vsel %vm1203_vm7, %v1866_v37, %v1868_v43  ;;  %v1923_v47 = vsel %vm1215_vm6, %v1860_v24, %v1868_v43  ;;  %v1903_v61 = vsel %vm1215_vm6, %v1845_v57, %v1853_v55 }
 0xa5d   : > { %2596 = vmatpush3.bf16.msra.mxu1 %v1923_v47  ;;  %v1919_v50 = vsel %vm1215_vm6, %v1862_v44, %v1870_v45 }
 0xa5e   : > { %1942 = vmatprep.subr.bf16.mxu0 %v1919_v50  ;;  %v1834_v52 = vpop.permute.xlu0 %1833  ;;  %2597 = vmatprep.subr.bf16.mxu1 %v2747_v4 }
 0xa5f   : > { %v1852_v31 = vpop.permute.xlu1 %1851  ;;  %1943 = vmatpush1.bf16.msra.mxu0 %v1915_v53  ;;  %v1837_v62 = vsel %vm1167_vm11, %v1832_v38, %v1834_v52 }
 0xa60   : > { %v1854_v40 = vsel %vm1185_vm9, %v1850_v35, %v1852_v31  ;;  %v1911_v56 = vsel %vm1215_vm6, %v1844_v21, %v1852_v31  ;;  %v1891_v8 = vsel %vm1215_vm6, %v1829_v3, %v1837_v62 }
 0xa61   : > { %2598 = vmatpush3.bf16.msra.mxu1 %v1911_v56  ;;  %v1907_v58 = vsel %vm1215_vm6, %v1846_v36, %v1854_v40 }
 0xa62   : > { %1944 = vmatprep.subr.bf16.mxu0 %v1907_v58  ;;  %v1818_v60 = vpop.permute.xlu0 %1817  ;;  %2599 = vmatprep.subr.bf16.mxu1 %v2747_v4 }
 0xa63   : > { %v1836_v63 = vpop.permute.xlu1 %1835  ;;  %1945 = vmatpush1.bf16.msra.mxu0 %v1903_v61 }
 0xa64   : > { %v1838_v1 = vsel %vm1167_vm11, %v1834_v52, %v1836_v63  ;;  %v1899_v2 = vsel %vm1215_vm6, %v1828_v18, %v1836_v63 }
 0xa65   : > { %2600 = vmatpush3.bf16.msra.mxu1 %v1899_v2  ;;  %v1895_v59 = vsel %vm1215_vm6, %v1830_v0, %v1838_v1 }
 0xa66   : > { %1946 = vmatprep.subr.bf16.mxu0 %v1895_v59  ;;  %v1816_v5 = vpop.permute.xlu0 %1815  ;;  %2601 = vmatprep.subr.bf16.mxu1 %v2747_v4 }
 0xa67   : > { %v1821_v9 = vsel %vm1149_vm13, %v1816_v5, %v1818_v60  ;;  %v1820_v10 = vpop.permute.xlu1 %1819  ;;  %1947 = vmatpush1.bf16.msra.mxu0 %v1891_v8  ;;  %v2153_v5 = vld [vmem:[%s3792_s5 + $0xf8] sm:$0xff]  ;;  %v2152_v8 = vld [vmem:[%s3792_s5 + $0xf0] sm:$0xff] }
 0xa68   : > { %v1822_v11 = vsel %vm1149_vm13, %v1818_v60, %v1820_v10  ;;  %v1887_v12 = vsel %vm1215_vm6, %v3398_v7, %v1820_v10  ;;  %v1880_v14 = vsel %vm1215_vm6, %v3387_v49, %v1821_v9  ;;  %v2151_v9 = vld [vmem:[%s3792_s5 + $0xe8] sm:$0xff]  ;;  %v2149_v10 = vld [vmem:[%s3792_s5 + $0xd8] sm:$0xff] }
 0xa69   : > { %2602 = vmatpush3.bf16.msra.mxu1 %v1887_v12  ;;  %v1884_v13 = vsel %vm1215_vm6, %v3390_v54, %v1822_v11  ;;  %v2148_v11 = vld [vmem:[%s3792_s5 + $0xd0] sm:$0xff]  ;;  %v2147_v12 = vld [vmem:[%s3792_s5 + $0xc8] sm:$0xff] }
 0xa6a   : > { %1948 = vmatprep.subr.bf16.mxu0 %v1884_v13  ;;  %v2146_v13 = vld [vmem:[%s3792_s5 + $0xc0] sm:$0xff] }
 0xa6b   : > { %1949 = vmatpush1.bf16.msra.mxu0 %v1880_v14  ;;  %v2145_v14 = vld [vmem:[%s3792_s5 + $0xb8] sm:$0xff] }
 0xa6c   : > { %2604 = vmatmul.mubr.msk.bf16.vlgmr.msra.gmra.mxu1 %vm3819_vm2, %v3332_v27  ;;  %2218 = vmatprep.subr.mxu0 %v2153_v5  ;;  %v2201_v5 = vld [vmem:[%s3792_s5 + $0x278] sm:$0xff] }
 0xa6d   : > { %2353 = vmatprep.mubr.f32.mxu1 %v2747_v4 }
 0xa6e   : > { %2512 = vmatmul.mubr.msk.bf16.vlgmr.msra.gmra.mxu0 %vm3820_vm3, %v3332_v27 }
 0xa6f   : > { %2219 = vmatpush1.msra.mxu0 %v2152_v8 }
 0xa70   : > { %2220 = vmatprep.subr.mxu0 %v2151_v9  ;;  %v2169_v9 = vld [vmem:[%s3792_s5 + $0x178] sm:$0xff] }
 0xb2c   : > { %v2009_v15 = vpop.f32.mrf.mxu1 }
 0xb2d   : > { %v2010_v7 = vadd.f32 %v2009_v15, %v3344_v19  ;;  %v2144_v15 = vld [vmem:[%s3792_s5 + $0xb0] sm:$0xff] }
 0xb2e   : > { %v1968_v16 = vpop.f32.mrf.mxu0  ;;  %v2605_v17 = vpop.f32.mrf.mxu1 }
 0xb2f   : > { %v1969_v54 = vadd.f32 %v1968_v16, %v3344_v19  ;;  %v3481_v20 = vmul.f32 %v2010_v7, %v3193_v41  ;;  %v2143_v7 = vld [vmem:[%s3792_s5 + $0xa8] sm:$0xff]  ;;  %v2142_v16 = vld [vmem:[%s3792_s5 + $0xa0] sm:$0xff]  ;;  %v2141_v17 = vld [vmem:[%s3792_s5 + $0x98] sm:$0xff] }
 0xb30   : > { %v1970_v49 = vpop.f32.mrf.mxu0  ;;  %v2012_v22 = vpop.f32.mrf.mxu1 }
 0xb31   : > { %v3484_v24 = vmul.f32 %v1969_v54, %v3198_v46  ;;  %v1971_v4 = vadd.f32 %v1970_v49, %v3344_v19  ;;  %v2025_v18 = vmul.f32 %v3481_v20, %v3481_v20  ;;  %v2019_v19 = vsel %vm1381_vm4, %v3481_v20, 0.0  ;;  %v2140_v54 = vld [vmem:[%s3792_s5 + $0x90] sm:$0xff]  ;;  %v2139_v49 = vld [vmem:[%s3792_s5 + $0x88] sm:$0xff]  ;;  %v2138_v22 = vld [vmem:[%s3792_s5 + $0x80] sm:$0xff] }
 0xb32   : > { %v1972_v25 = vpop.f32.mrf.mxu0  ;;  %v2606_v21 = vpop.f32.mrf.mxu1 }
 0xb33   : > { %v3488_v27 = vmul.f32 %v1971_v4, %v3203_v51  ;;  %v2023_v30 = vmul.f32 %v3484_v24, %v3484_v24  ;;  %v2027_v51 = vsel %vm1381_vm4, %v2025_v18, 0.0  ;;  %v2137_v4 = vld [vmem:[%s3792_s5 + $0x78] sm:$0xff]  ;;  %v2136_v25 = vld [vmem:[%s3792_s5 + $0x70] sm:$0xff]  ;;  %v2135_v21 = vld [vmem:[%s3792_s5 + $0x68] sm:$0xff] }
 0xb34   : > { %v1973_v29 = vpop.f32.mrf.mxu0  ;;  %v2133_v18 = vld [vmem:[%s3792_s5 + $0x58] sm:$0xff] }
 0xb35   : > { %v2018_v41 = vadd.f32 %v3488_v27, %v3484_v24  ;;  %v2024_v46 = vmul.f32 %v3488_v27, %v3488_v27  ;;  %v2134_v29 = vld [vmem:[%s3792_s5 + $0x60] sm:$0xff] }
 0xb37   : > { %v2020_v26 = vadd.f32 %v2019_v19, %v2018_v41  ;;  %v2026_v32 = vadd.f32 %v2024_v46, %v2023_v30  ;;  %v2132_v41 = vld [vmem:[%s3792_s5 + $0x50] sm:$0xff]  ;;  %v2131_v30 = vld [vmem:[%s3792_s5 + $0x48] sm:$0xff]  ;;  %v3582_v46 = vld [vmem:[%s574_s27] sm:$0x1] }
 0xb38   : > { %v2517_v19 = vmul.f32 -1.442695, %v3582_v46 }
 0xb39   : > { %2021 = vadd.xlane.f32.xlu1 %v2020_v26  ;;  %v2028_v33 = vadd.f32 %v2027_v51, %v2026_v32  ;;  %v2130_v26 = vld [vmem:[%s3792_s5 + $0x40] sm:$0xff]  ;;  %v2129_v32 = vld [vmem:[%s3792_s5 + $0x38] sm:$0xff]  ;;  %v2128_v51 = vld [vmem:[%s3792_s5 + $0x30] sm:$0xff] }
 0xb3b   : > { %2029 = vadd.xlane.f32.xlu0 %v2028_v33 }
 0xbc2   : > { %v2022_v37 = vpop.xlane.xlu1 %2021 }
 0xbc3   : > { %v2031_v38 = vmul.f32 %v3218_v6, %v2022_v37  ;;  %v2127_v37 = vld [vmem:[%s3792_s5 + $0x28] sm:$0xff] }
 0xbc4   : > { %v2030_v35 = vpop.xlane.xlu0 %2029 }
 0xbc5   : > { %v2032_v42 = vsel %vm1395_vm14, %v2031_v38, 0.0  ;;  %v2039_v43 = vmul.f32 %v3218_v6, %v2030_v35 }
 0xbc6   : > { %v2033_v44 = vrot.slane %v2032_v42, 4 }
 0xbc7   : > { %v2040_v45 = vsel %vm1395_vm14, %v2039_v43, 0.0  ;;  %v2126_v43 = vld [vmem:[%s3792_s5 + $0x20] sm:$0xff] }
 0xbc8   : > { %v2034_v47 = vadd.f32 %v2033_v44, %v2032_v42  ;;  %v2041_v48 = vrot.slane %v2040_v45, 4 }
 0xbca   : > { %v2035_v50 = vrot.slane %v2034_v47, 2  ;;  %v2042_v52 = vadd.f32 %v2041_v48, %v2040_v45  ;;  %v2123_v48 = vld [vmem:[%s3792_s5 + $0x8] sm:$0xff] }
 0xbcc   : > { %v2036_v53 = vadd.f32 %v2035_v50, %v2034_v47  ;;  %v2043_v55 = vrot.slane %v2042_v52, 2  ;;  %v2125_v47 = vld [vmem:[%s3792_s5 + $0x18] sm:$0xff] }
 0xbce   : > { %v2037_v31 = vrot.slane %v2036_v53, 1  ;;  %v2044_v36 = vadd.f32 %v2043_v55, %v2042_v52  ;;  %v2185_v52 = vld [vmem:[%s3792_s5 + $0x1f8] sm:$0xff]  ;;  %v2183_v55 = vld [vmem:[%s3792_s5 + $0x1e8] sm:$0xff] }
 0xbd0   : > { %v2045_v40 = vrot.slane %v2044_v36, 1  ;;  %v2038_v56 = vadd.f32 %v2037_v31, %v2036_v53  ;;  %v2184_v53 = vld [vmem:[%s3792_s5 + $0x1f0] sm:$0xff]  ;;  %v2182_v31 = vld [vmem:[%s3792_s5 + $0x1e0] sm:$0xff] }
 0xbd2   : > { %v2046_v57 = vadd.f32 %v2045_v40, %v2044_v36  ;;  %v2047_v58 = vmul.f32 0.001953125, %v2038_v56  ;;  %v2181_v36 = vld [vmem:[%s3792_s5 + $0x1d8] sm:$0xff]  ;;  %v2180_v40 = vld [vmem:[%s3792_s5 + $0x1d0] sm:$0xff]  ;;  %v2179_v56 = vld [vmem:[%s3792_s5 + $0x1c8] sm:$0xff] }
 0xbd4   : > { %v2048_v60 = vmul.f32 0.001953125, %v2046_v57  ;;  %v2053_v61 = vmul.f32 %v3218_v6, %v2047_v58  ;;  %v2049_v62 = vmul.f32 %v2047_v58, %v2047_v58  ;;  %v2178_v57 = vld [vmem:[%s3792_s5 + $0x1c0] sm:$0xff]  ;;  %v2177_v58 = vld [vmem:[%s3792_s5 + $0x1b8] sm:$0xff] }
 0xbd6   : > { %v2054_v63 = vsel %vm1395_vm14, %v2053_v61, 0.0  ;;  %v2050_v0 = vsub.f32 %v2048_v60, %v2049_v62  ;;  %v2176_v60 = vld [vmem:[%s3792_s5 + $0x1b0] sm:$0xff]  ;;  %v2175_v61 = vld [vmem:[%s3792_s5 + $0x1a8] sm:$0xff]  ;;  %v2174_v62 = vld [vmem:[%s3792_s5 + $0x1a0] sm:$0xff] }
 0xbd7   : > { %2055 = vadd.xlane.f32.xlu1 %v2054_v63  ;;  %v2173_v63 = vld [vmem:[%s3792_s5 + $0x198] sm:$0xff] }
 0xbd8   : > { %v2051_v1 = vadd.f32 1e-05, %v2050_v0  ;;  %v2172_v0 = vld [vmem:[%s3792_s5 + $0x190] sm:$0xff] }
 0xbda   : > { %2721 = vrsqrt.f32 %v2051_v1  ;;  %v2203_v1 = vld [vmem:[%s3792_s5 + $0x288] sm:$0xf] }
 0xbdb   : > { %2723 = vpow2.f32 %v2517_v19  ;;  %2518 = vmatprep.subr.msk.mxu1 %vm1215_vm6, %v2203_v1  ;;  %v2190_v19 = vld [vmem:[%s3792_s5 + $0x220] sm:$0xff] }
 0xbe7   : > { %v2722_v2 = vpop.eup %2721 }
 0xbe8   : > { %v2057_v3 = vmul.f32 %v2722_v2, %v3218_v6  ;;  %v2150_v6 = vld [vmem:[%s3792_s5 + $0xe0] sm:$0xff]  ;;  %v2724_v44 = vpop.eup %2723  ;;  %v2171_v2 = vld [vmem:[%s3792_s5 + $0x188] sm:$0xff] }
 0xbe9   : > { %2221 = vmatpush1.msra.mxu0 %v2150_v6  ;;  %v2105_v50 = vadd.f32 1.0, %v2724_v44  ;;  %v2200_v6 = vld [vmem:[%s3792_s5 + $0x270] sm:$0xff]  ;;  %v2154_v44 = vld [vmem:[%s3792_s5 + $0x100] sm:$0xff] }
 0xbea   : > { %v2058_v59 = vsel %vm1395_vm14, %v2057_v3, 0.0  ;;  %2222 = vmatprep.subr.mxu0 %v2149_v10  ;;  %v2202_v3 = vld [vmem:[%s3792_s5 + $0x280] sm:$0xf]  ;;  %v2168_v10 = vld [vmem:[%s3792_s5 + $0x170] sm:$0xff] }
 0xbeb   : > { %2059 = vadd.xlane.f32.xlu0 %v2058_v59  ;;  %2223 = vmatpush1.msra.mxu0 %v2148_v11  ;;  %2725 = vrcp.f32 %v2105_v50  ;;  %v2170_v59 = vld [vmem:[%s3792_s5 + $0x180] sm:$0xff]  ;;  %v2199_v11 = vld [vmem:[%s3792_s5 + $0x268] sm:$0xff] }
 0xbec   : > { %2224 = vmatprep.subr.mxu0 %v2147_v12  ;;  %2519 = vmatpush1.msk.msra.mxu1 %vm1215_vm6, %v2202_v3  ;;  %v2167_v12 = vld [vmem:[%s3792_s5 + $0x168] sm:$0xff] }
 0xbed   : > { %2225 = vmatpush1.msra.mxu0 %v2146_v13  ;;  %2305 = vmatprep.subr.mxu1 %v2201_v5  ;;  %v2198_v13 = vld [vmem:[%s3792_s5 + $0x260] sm:$0xff] }
 0xbee   : > { %2226 = vmatprep.subr.mxu0 %v2145_v14  ;;  %2306 = vmatpush1.msra.mxu1 %v2200_v6 }
 0xbef   : > { %2227 = vmatpush1.msra.mxu0 %v2144_v15  ;;  %2307 = vmatprep.subr.mxu1 %v2199_v11  ;;  %v2166_v15 = vld [vmem:[%s3792_s5 + $0x160] sm:$0xff] }
 0xbf0   : > { %2228 = vmatprep.subr.mxu0 %v2143_v7  ;;  %2308 = vmatpush1.msra.mxu1 %v2198_v13  ;;  %v2197_v7 = vld [vmem:[%s3792_s5 + $0x258] sm:$0xff] }
 0xbf1   : > { %2229 = vmatpush1.msra.mxu0 %v2142_v16  ;;  %2309 = vmatprep.subr.mxu1 %v2197_v7  ;;  %v2165_v16 = vld [vmem:[%s3792_s5 + $0x158] sm:$0xff] }
 0xbf2   : > { %2230 = vmatprep.subr.mxu0 %v2141_v17  ;;  %v2196_v17 = vld [vmem:[%s3792_s5 + $0x250] sm:$0xff] }
 0xbf3   : > { %2231 = vmatpush1.msra.mxu0 %v2140_v54  ;;  %2310 = vmatpush1.msra.mxu1 %v2196_v17  ;;  %v2164_v54 = vld [vmem:[%s3792_s5 + $0x150] sm:$0xff] }
 0xbf4   : > { %2232 = vmatprep.subr.mxu0 %v2139_v49  ;;  %v2195_v49 = vld [vmem:[%s3792_s5 + $0x248] sm:$0xff] }
 0xbf5   : > { %2233 = vmatpush1.msra.mxu0 %v2138_v22  ;;  %2311 = vmatprep.subr.mxu1 %v2195_v49  ;;  %v2163_v22 = vld [vmem:[%s3792_s5 + $0x148] sm:$0xff] }
 0xbf6   : > { %2234 = vmatprep.subr.mxu0 %v2137_v4  ;;  %v2194_v4 = vld [vmem:[%s3792_s5 + $0x240] sm:$0xff] }
 0xbf7   : > { %2235 = vmatpush1.msra.mxu0 %v2136_v25  ;;  %2312 = vmatpush1.msra.mxu1 %v2194_v4 }
 0xbf8   : > { %2236 = vmatprep.subr.mxu0 %v2135_v21  ;;  %v2726_v8 = vpop.eup %2725  ;;  %v2162_v21 = vld [vmem:[%s3792_s5 + $0x140] sm:$0xff] }
 0xbf9   : > { %2237 = vmatpush1.msra.mxu0 %v2134_v29  ;;  %v2108_v14 = vmul.f32 %v2726_v8, %v3582_v46  ;;  %v2193_v29 = vld [vmem:[%s3792_s5 + $0x238] sm:$0xff]  ;;  %v2159_v46 = vld [vmem:[%s3792_s5 + $0x128] sm:$0xff] }
 0xbfa   : > { %2238 = vmatprep.subr.mxu0 %v2133_v18  ;;  %v2109_v18 = vld [vmem:[%s3802_s15] sm:$0xff]  ;;  %2313 = vmatprep.subr.mxu1 %v2193_v29 }
 0xbfb   : > { %2239 = vmatpush1.msra.mxu0 %v2132_v41  ;;  %v2114_v25 = vrot.slane %v2108_v14, %v1364_v39  ;;  %v2192_v39 = vld [vmem:[%s3792_s5 + $0x230] sm:$0xff] }
 0xbfc   : > { %2240 = vmatprep.subr.mxu0 %v2131_v30  ;;  %2314 = vmatpush1.msra.mxu1 %v2192_v39  ;;  %v2160_v41 = vld [vmem:[%s3792_s5 + $0x130] sm:$0xff]  ;;  %v2191_v30 = vld [vmem:[%s3792_s5 + $0x228] sm:$0xff] }
 0xbfd   : > { %2241 = vmatpush1.msra.mxu0 %v2130_v26  ;;  %2315 = vmatprep.subr.mxu1 %v2191_v30  ;;  %v2116_v26 = vmul.f32 %v2114_v25, %v2109_v18 }
 0xbfe   : > { %2242 = vmatprep.subr.mxu0 %v2129_v32  ;;  %2316 = vmatpush1.msra.mxu1 %v2190_v19  ;;  %v2158_v32 = vld [vmem:[%s3792_s5 + $0x120] sm:$0xff] }
 0xbff   : > { %2243 = vmatpush1.msra.mxu0 %v2128_v51  ;;  %v2189_v51 = vld [vmem:[%s3792_s5 + $0x218] sm:$0xff] }
 0xc00   : > { %2244 = vmatprep.subr.mxu0 %v2127_v37  ;;  %2317 = vmatprep.subr.mxu1 %v2189_v51  ;;  %v2188_v37 = vld [vmem:[%s3792_s5 + $0x210] sm:$0xff] }
 0xc01   : > { %2245 = vmatpush1.msra.mxu0 %v2126_v43  ;;  %2318 = vmatpush1.msra.mxu1 %v2188_v37  ;;  %v2186_v43 = vld [vmem:[%s3792_s5 + $0x200] sm:$0xff] }
 0xc02   : > { %2246 = vmatprep.subr.mxu0 %v2125_v47 }
 0xc60   : > { %v2056_v35 = vpop.xlane.xlu1 %2055 }
 0xc74   : > { %v2060_v33 = vpop.xlane.xlu0 %2059 }
 0xc75   : > { %v2061_v38 = vmul.f32 %v2060_v33, %v3370_v23  ;;  %v2124_v23 = vld [vmem:[%s3792_s5 + $0x10] sm:$0xff]  ;;  %v2157_v33 = vld [vmem:[%s3792_s5 + $0x118] sm:$0xff] }
 0xc76   : > { %2247 = vmatpush1.msra.mxu0 %v2124_v23 }
 0xc77   : > { %v2062_v42 = vmul.f32 %v2061_v38, %v2056_v35  ;;  %2066 = vperm.xlu0 %2628, %v2061_v38   ;;  %2248 = vmatprep.subr.mxu0 %v2123_v48  ;;  %v2156_v38 = vld [vmem:[%s3792_s5 + $0x110] sm:$0xff]  ;;  %v2187_v35 = vld [vmem:[%s3792_s5 + $0x208] sm:$0xff] }
 0xc78   : > { %2319 = vmatprep.subr.mxu1 %v2187_v35 }
 0xc79   : > { %v2063_v45 = vsub.f32 %v3376_v28, %v2062_v42  ;;  %v2122_v28 = vld [vmem:[%s3792_s5] sm:$0xff]  ;;  %v2155_v42 = vld [vmem:[%s3792_s5 + $0x108] sm:$0xff]  ;;  %2320 = vmatpush1.msra.mxu1 %v2186_v43 }
 0xc7a   : > { %2249 = vmatpush1.msra.mxu0 %v2122_v28 }
 0xc7b   : > { %2074 = vperm.xlu1 %2627, %v2063_v45   ;;  %2250 = vmatprep.subr.mxu0 %v2185_v52  ;;  %v2117_v45 = vsel %vm3821_vm5, %v2116_v26, 0.0 }
 0xc7c   : > { %2251 = vmatpush2.msra.mxu0 %v2184_v53 }
 0xc7d   : > { %2252 = vmatprep.subr.mxu0 %v2183_v55 }
 0xc7e   : > { %2253 = vmatpush2.msra.mxu0 %v2182_v31 }
 0xc7f   : > { %2254 = vmatprep.subr.mxu0 %v2181_v36 }
 0xc80   : > { %2255 = vmatpush2.msra.mxu0 %v2180_v40 }
 0xc81   : > { %2256 = vmatprep.subr.mxu0 %v2179_v56 }
 0xc82   : > { %2257 = vmatpush2.msra.mxu0 %v2178_v57 }
 0xc83   : > { %2258 = vmatprep.subr.mxu0 %v2177_v58 }
 0xc84   : > { %2259 = vmatpush2.msra.mxu0 %v2176_v60 }
 0xc85   : > { %2260 = vmatprep.subr.mxu0 %v2175_v61 }
 0xc86   : > { %2261 = vmatpush2.msra.mxu0 %v2174_v62 }
 0xc87   : > { %2262 = vmatprep.subr.mxu0 %v2173_v63 }
 0xc88   : > { %2263 = vmatpush2.msra.mxu0 %v2172_v0 }
 0xc89   : > { %2264 = vmatprep.subr.mxu0 %v2171_v2  ;;  %v2120_v2 = vld [vmem:[%s3803_s16] sm:$0xff] }
 0xc8a   : > { %2265 = vmatpush2.msra.mxu0 %v2170_v59 }
 0xc8b   : > { %2266 = vmatprep.subr.mxu0 %v2169_v9 }
 0xc8c   : > { %2267 = vmatpush2.msra.mxu0 %v2168_v10 }
 0xc8d   : > { %2268 = vmatprep.subr.mxu0 %v2167_v12 }
 0xc8e   : > { %2269 = vmatpush2.msra.mxu0 %v2166_v15 }
 0xc8f   : > { %2270 = vmatprep.subr.mxu0 %v2165_v16 }
 0xc90   : > { %2271 = vmatpush2.msra.mxu0 %v2164_v54 }
 0xc91   : > { %2272 = vmatprep.subr.mxu0 %v2163_v22 }
 0xc92   : > { %2273 = vmatpush2.msra.mxu0 %v2162_v21 }
 0xc93   : > { %2274 = vmatprep.subr.mxu0 %v2161_v34 }
 0xc94   : > { %2275 = vmatpush2.msra.mxu0 %v2160_v41 }
 0xc95   : > { %2276 = vmatprep.subr.mxu0 %v2159_v46 }
 0xc96   : > { %2277 = vmatpush2.msra.mxu0 %v2158_v32 }
 0xc97   : > { %2278 = vmatprep.subr.mxu0 %v2157_v33 }
 0xc98   : > { %2279 = vmatpush2.msra.mxu0 %v2156_v38 }
 0xc99   : > { %2280 = vmatprep.subr.mxu0 %v2155_v42 }
 0xc9a   : > { %2281 = vmatpush2.msra.mxu0 %v2154_v44 }
 0xc9f   : > { %2118 = vadd.xlane.f32.xlu1 %v2117_v45 }
 0xcf2   : > { %v2067_v47 = vpop.permute.xlu0 %2066 }
 0xcf3   : > { %v2069_v23 = vmul.f32 %v2067_v47, %v3484_v24  ;;  %v2070_v48 = vmul.f32 %v2067_v47, %v3488_v27  ;;  %v2071_v50 = vmul.f32 %v2067_v47, %v3481_v20 }
 0xcf6   : > { %v2075_v28 = vpop.permute.xlu1 %2074 }
 0xcf7   : > { %v2077_v52 = vadd.f32 %v2075_v28, %v2069_v23  ;;  %v2078_v53 = vadd.f32 %v2075_v28, %v2070_v48  ;;  %v2079_v55 = vadd.f32 %v2075_v28, %v2071_v50 }
 0xcf9   : > { %v2514_v31 = vmul.f32 -1.442695, %v2077_v52  ;;  %v2515_v36 = vmul.f32 -1.442695, %v2078_v53  ;;  %v2516_v40 = vmul.f32 -1.442695, %v2079_v55 }
 0xcfb   : > { %2727 = vpow2.f32 %v2514_v31 }
 0xcfc   : > { %2729 = vpow2.f32 %v2515_v36 }
 0xcfd   : > { %2731 = vpow2.f32 %v2516_v40 }
 0xd08   : > { %v2728_v56 = vpop.eup %2727 }
 0xd09   : > { %v2730_v57 = vpop.eup %2729  ;;  %v2089_v58 = vadd.f32 1.0, %v2728_v56 }
 0xd0a   : > { %v2732_v60 = vpop.eup %2731  ;;  %v2090_v61 = vadd.f32 1.0, %v2730_v57 }
 0xd0b   : > { %v2091_v24 = vadd.f32 1.0, %v2732_v60  ;;  %2733 = vrcp.f32 %v2089_v58 }
 0xd0c   : > { %2735 = vrcp.f32 %v2090_v61 }
 0xd0d   : > { %2737 = vrcp.f32 %v2091_v24 }
 0xd18   : > { %v2734_v20 = vpop.eup %2733 }
 0xd19   : > { %v2736_v27 = vpop.eup %2735  ;;  %v2098_v62 = vmul.f32 %v2734_v20, %v2077_v52 }
 0xd1a   : > { %v2738_v63 = vpop.eup %2737  ;;  %v2099_v0 = vmul.f32 %v2736_v27, %v2078_v53 }
 0xd1b   : > { %v2100_v1 = vmul.f32 %v2738_v63, %v2079_v55 }
 0xd1c   : > { %2282 = vmatprep.mubr.f32.mxu0 %v2099_v0 }
 0xd1d   : > { %2520 = vmatmul.mubr.msk.f32.vlgmr.msra.gmra.mxu1 %vm1381_vm4, %v2100_v1  ;;  %2283 = vmatmul.mubr.f32.vlgmr.msra.gmra.mxu0 %v2098_v62 }
 0xd28   : > { %v2119_v3 = vpop.xlane.xlu1 %2118 }
 0xd29   : > { %v2121_v59 = vadd.f32 %v2120_v2, %v2119_v3 }
 0xd2b   : > { %2206 = vperm.xlu0 %2628, %v2121_v59  }
 0xda6   : > { %v2207_v5 = vpop.permute.xlu0 %2206 }
 0xddd   : > { %v2355_v8 = vpop.f32.mrf.mxu1  ;;  %v2284_v9 = vpop.f32.mrf.mxu0 }
 0xdde   : > { %v2285_v6 = vadd.f32 %v2284_v9, %v2207_v5 }
 0xddf   : > { %v2286_v10 = vpop.f32.mrf.mxu0  ;;  %v2357_v13 = vpop.f32.mrf.mxu1 }
 0xde0   : > { %v2356_v11 = vadd.f32 %v2355_v8, %v2285_v6  ;;  %v2287_v12 = vadd.f32 %v2286_v10, %v2207_v5 }
 0xde2   : > { %2360 = vst [vmem:[%s579_s1] sm:$0xff] %v2356_v11  ;;  %v2358_v14 = vadd.f32 %v2357_v13, %v2287_v12 }
 0xde4   : > { %2361 = vst [vmem:[%s579_s1 + $0x8] sm:$0xff] %v2358_v14 }
 0xde5 PF: > { %s27_s24 = sadd.s32 1, %s2745_s24  }
 0xde6   : > { %p24_p4 = scmp.ge.s32.totalorder %s27_s24, 4  }
 0xde8   :  { %26 = sbr.rel (!%p24_p4) target bundleno = 3 (0x3), region = 124 }

</bundles_post_ra>
